<compile_context>
chip_gen: v7x
topology: tpu7x:2x2x1
jax: 0.10.0
libtpu: 0.0.40
codegen_flags: <defaults>
</compile_context>

<pallas_src>
import functools

import jax
import jax.numpy as jnp
import numpy as np
from jax.experimental import pallas as pl
from jax.experimental.pallas import tpu as pltpu

EPS = 1e-5


def _pick_group(N, C, S):
    """Samples per conv grid step: smallest divisor of N giving 8-aligned row
    blocks and a slab that comfortably fits scoped VMEM (v7x has only 64 MiB
    physical); falls back to the whole batch (block == full dims is legal)."""
    slab_budget = 6 * 1024 * 1024
    for bn in range(1, N + 1):
        if N % bn:
            continue
        if (bn * C) % 8 == 0 and 27 * bn * C * S * 4 <= slab_budget:
            return bn
    return N


def _tap_tables(C, D, H, W):
    """Static per-tap flattened-spatial shifts and (32, S) 0/1 boundary masks."""
    S = D * H * W
    HW = H * W
    pos = np.arange(S)
    d = pos // HW
    h = (pos % HW) // W
    w = pos % W
    masks = np.zeros((32, S), np.float32)   # 27 taps, padded to 32 rows
    shifts = []
    k = 0
    for dd in (-1, 0, 1):
        for dh in (-1, 0, 1):
            for dw in (-1, 0, 1):
                shifts.append(dd * HW + dh * W + dw)
                ok = ((d + dd >= 0) & (d + dd < D) &
                      (h + dh >= 0) & (h + dh < H) &
                      (w + dw >= 0) & (w + dw < W))
                masks[k] = ok.astype(np.float32)
                k += 1
    return tuple(shifts), masks


def bn_stats_kernel(x_ref, gamma_ref, beta_ref, scale_ref, shift_ref,
                    sum_ref, sq_ref, *, Bn, C, inv_count):
    # x_ref: (Bn*C, S) block; gamma/beta/scale/shift: (C, 1); sum/sq: (Bn*C, 1)
    g = pl.program_id(0)

    @pl.when(g == 0)
    def _init():
        sum_ref[...] = jnp.zeros_like(sum_ref)
        sq_ref[...] = jnp.zeros_like(sq_ref)

    x = x_ref[...]
    sum_ref[...] += jnp.sum(x, axis=1, keepdims=True)
    sq_ref[...] += jnp.sum(x * x, axis=1, keepdims=True)

    @pl.when(g == pl.num_programs(0) - 1)
    def _finalize():
        # Combine the Bn per-sample row groups into per-channel totals.
        ps = sum_ref[pl.ds(0, C), :]
        pq = sq_ref[pl.ds(0, C), :]
        for b in range(1, Bn):
            ps = ps + sum_ref[pl.ds(b * C, C), :]
            pq = pq + sq_ref[pl.ds(b * C, C), :]
        mu = ps * inv_count
        var = pq * inv_count - mu * mu                      # biased variance
        scale = gamma_ref[...] * jax.lax.rsqrt(var + EPS)
        scale_ref[...] = scale
        shift_ref[...] = beta_ref[...] - mu * scale
    # TODO(synk): on v7x the stats reduction could additionally be split across
    # both TensorCores (per-core partial sums + combine); kept single-pipeline
    # "arbitrary" here.


def bottleneck_conv_kernel(x_ref, scale_ref, shift_ref, w_ref, b_ref, mask_ref,
                           out_ref, slab_ref, *, S, R, tap_shifts):
    # Per-group block:
    #   x_ref/out_ref: (R, S)   rows ordered (sample-in-group, channel)
    #   scale/shift/b: (R, 1)   per-row BN scale/shift and conv bias
    #   w_ref:         (R, 27*R) block-diagonal-over-samples im2col weight
    #   mask_ref:      (32, S)  per-tap 0/1 boundary masks
    #   slab_ref:      (27*R, S) VMEM im2col slab, rows ordered (tap, sample, ch)
    x = x_ref[...]                                               # (R, S)
    y = jnp.maximum(x * scale_ref[...] + shift_ref[...], 0.0)    # relu(bn2(x))

    # im2col: each tap is a static lane roll of y (per-row spatial vector) plus
    # one broadcast mask multiply; every store is a full 8-aligned (R, S) tile.
    for k, sh in enumerate(tap_shifts):
        if sh == 0:
            t = y                                                # center tap
        else:
            t = pltpu.roll(y, shift=(-sh) % S, axis=1) * mask_ref[pl.ds(k, 1), :]
        slab_ref[pl.ds(k * R, R), :] = t

    # Single fused MXU matmul over all 27 taps; result rows already match the
    # (sample, channel) output layout, so the store is one dense (R, S) write.
    conv = jnp.dot(w_ref[...], slab_ref[...],
                   preferred_element_type=jnp.float32)           # (R, S)
    out_ref[...] = conv + b_ref[...] + x


def bottleneck_forward(x_ncdhw, gamma, beta, w_oidhw, b):
    """x_ncdhw: (N, C, D, H, W) like PyTorch. Returns (N, C, D, H, W)."""
    N, C, D, H, W = x_ncdhw.shape
    S = D * H * W
    Bn = _pick_group(N, C, S)
    R = Bn * C
    NG = N // Bn
    KROWS = 27 * R

    xf = x_ncdhw.astype(jnp.float32)
    x2 = xf.reshape(N * C, S)              # free reshape, no transpose

    tap_shifts, masks_np = _tap_tables(C, D, H, W)
    masks = jnp.asarray(masks_np)

    gamma_c = gamma.reshape(C, 1).astype(jnp.float32)
    beta_c = beta.reshape(C, 1).astype(jnp.float32)

    # ---- pass 1: gridded bn2 training-mode batch-stats reduction ----
    stats_kernel = functools.partial(bn_stats_kernel, Bn=Bn, C=C,
                                     inv_count=1.0 / float(N * S))
    scale_c, shift_c = pl.pallas_call(
        stats_kernel,
        out_shape=(jax.ShapeDtypeStruct((C, 1), jnp.float32),
                   jax.ShapeDtypeStruct((C, 1), jnp.float32)),
        grid=(NG,),
        in_specs=[
            pl.BlockSpec((R, S), lambda g: (g, 0)),
            pl.BlockSpec((C, 1), lambda g: (0, 0)),
            pl.BlockSpec((C, 1), lambda g: (0, 0)),
        ],
        out_specs=(pl.BlockSpec((C, 1), lambda g: (0, 0)),
                   pl.BlockSpec((C, 1), lambda g: (0, 0))),
        scratch_shapes=[pltpu.VMEM((R, 1), jnp.float32),
                        pltpu.VMEM((R, 1), jnp.float32)],
        compiler_params=pltpu.CompilerParams(
            dimension_semantics=("arbitrary",)),
    )(x2, gamma_c, beta_c)

    # Tiny per-row (sample, channel) affine / bias tables for the conv pass.
    scale_r = jnp.tile(scale_c, (Bn, 1))
    shift_r = jnp.tile(shift_c, (Bn, 1))
    bias_r = jnp.tile(b.reshape(C, 1).astype(jnp.float32), (Bn, 1))

    # Block-diagonal (over the Bn samples of a group) im2col weight:
    #   wbig[b*C + co, k*R + b*C + ci] = w[co, ci, kd, kh, kw]
    w_taps = jnp.transpose(w_oidhw.astype(jnp.float32),
                           (2, 3, 4, 0, 1)).reshape(27, C, C)     # [tap, co, ci]
    eye_b = jnp.eye(Bn, dtype=jnp.float32)
    wbig = jnp.einsum('xy,koi->xokyi', eye_b, w_taps).reshape(R, KROWS)

    # ---- pass 2: fused norm + 3x3x3 conv + bias + residual, Bn samples/step ----
    conv_kernel = functools.partial(bottleneck_conv_kernel,
                                    S=S, R=R, tap_shifts=tap_shifts)
    out2 = pl.pallas_call(
        conv_kernel,
        out_shape=jax.ShapeDtypeStruct((N * C, S), jnp.float32),
        grid=(NG,),
        in_specs=[
            pl.BlockSpec((R, S), lambda g: (g, 0)),
            pl.BlockSpec((R, 1), lambda g: (0, 0)),
            pl.BlockSpec((R, 1), lambda g: (0, 0)),
            pl.BlockSpec((R, KROWS), lambda g: (0, 0)),
            pl.BlockSpec((R, 1), lambda g: (0, 0)),
            pl.BlockSpec(masks.shape, lambda g: (0, 0)),
        ],
        out_specs=pl.BlockSpec((R, S), lambda g: (g, 0)),
        scratch_shapes=[pltpu.VMEM((KROWS, S), jnp.float32)],
        compiler_params=pltpu.CompilerParams(
            dimension_semantics=("parallel",),
            vmem_limit_bytes=32 * 1024 * 1024),
    )(x2, scale_r, shift_r, wbig, bias_r, masks)

    return out2.reshape(N, C, D, H, W)


def ref_forward(x, gamma, beta, w, b):
    """Pure-JAX reference of the (effective) PyTorch forward, NCDHW layout."""
    mu = jnp.mean(x, axis=(0, 2, 3, 4), keepdims=True)
    var = jnp.mean((x - mu) ** 2, axis=(0, 2, 3, 4), keepdims=True)
    g = gamma.reshape(1, -1, 1, 1, 1)
    bb = beta.reshape(1, -1, 1, 1, 1)
    y = jnp.maximum((x - mu) * jax.lax.rsqrt(var + EPS) * g + bb, 0.0)
    out = jax.lax.conv_general_dilated(
        y, w, window_strides=(1, 1, 1),
        padding=((1, 1), (1, 1), (1, 1)),
        dimension_numbers=("NCDHW", "OIDHW", "NCDHW"),
        precision=jax.lax.Precision.HIGHEST,
    )
    return out + b.reshape(1, -1, 1, 1, 1) + x


if __name__ == "__main__":
    # Small shapes: inplanes = planes = 4 (required for the module's forward to
    # be shape-consistent), stride = 1, batch = 2, spatial = 8^3.
    N, C, D, H, W = 2, 4, 8, 8, 8

    key = jax.random.PRNGKey(0)
    kx, kg, kb, kw, kc = jax.random.split(key, 5)
    x = jax.random.normal(kx, (N, C, D, H, W), dtype=jnp.float32)
    gamma = 1.0 + 0.1 * jax.random.normal(kg, (C,), dtype=jnp.float32)   # bn2.weight
    beta = 0.1 * jax.random.normal(kb, (C,), dtype=jnp.float32)          # bn2.bias
    w = 0.1 * jax.random.normal(kw, (C, C, 3, 3, 3), dtype=jnp.float32)  # conv2.weight
    b = 0.1 * jax.random.normal(kc, (C,), dtype=jnp.float32)             # conv2.bias

    out = jax.block_until_ready(jax.jit(bottleneck_forward)(x, gamma, beta, w, b))
    ref = jax.block_until_ready(ref_forward(x, gamma, beta, w, b))
    np.testing.assert_allclose(np.asarray(out), np.asarray(ref), rtol=1e-3, atol=1e-3)

    # TODO(synk): the dead bn1/relu/conv1 branch only updates bn1 running stats in
    # PyTorch; that side effect has no Pallas-visible output and is not modeled.
    print("KERNEL_OK")
</pallas_src>

<mosaic_0001>
module attributes {stable_mosaic.version = 11 : i64} {
  func.func @bn_stats_kernel(%arg0: i32, %arg1: memref<8x512xf32, #tpu.memory_space<vmem>>, %arg2: memref<4x1xf32, #tpu.memory_space<vmem>>, %arg3: memref<4x1xf32, #tpu.memory_space<vmem>>, %arg4: memref<4x1xf32, #tpu.memory_space<vmem>>, %arg5: memref<4x1xf32, #tpu.memory_space<vmem>>, %arg6: memref<8x1xf32, #tpu.memory_space<vmem>>, %arg7: memref<8x1xf32, #tpu.memory_space<vmem>>) attributes {dimension_semantics = [#tpu.dimension_semantics<arbitrary>], iteration_bounds = array<i64: 1>, scalar_prefetch = 0 : i64, scratch_operands = 2 : i64, tpu.core_type = #tpu.core_type<tc>, window_params = [{transform_indices = @transform_0, window_bounds = array<i64: 8, 512>}, {pipeline_mode = #tpu.pipeline_mode<synchronous>, transform_indices = @transform_1, window_bounds = array<i64: 4, 1>}, {pipeline_mode = #tpu.pipeline_mode<synchronous>, transform_indices = @transform_2, window_bounds = array<i64: 4, 1>}, {pipeline_mode = #tpu.pipeline_mode<synchronous>, transform_indices = @transform_3, window_bounds = array<i64: 4, 1>}, {pipeline_mode = #tpu.pipeline_mode<synchronous>, transform_indices = @transform_4, window_bounds = array<i64: 4, 1>}]} {
    %c0_i32 = arith.constant 0 : i32
    %0 = arith.cmpi eq, %arg0, %c0_i32 : i32
    %1 = arith.extui %0 : i1 to i32
    %c0_i32_0 = arith.constant 0 : i32
    %2 = arith.cmpi ne, %1, %c0_i32_0 : i32
    scf.if %2 {
      %cst_13 = arith.constant 0.000000e+00 : f32
      %18 = vector.broadcast %cst_13 : f32 to vector<8x1xf32>
      %c0_14 = arith.constant 0 : index
      %c0_15 = arith.constant 0 : index
      %19 = vector.load %arg6[%c0_14, %c0_15] : memref<8x1xf32, #tpu.memory_space<vmem>>, vector<8x1xf32>
      tpu.vector_store %arg6[%c0_14, %c0_15], %18 {strides = array<i32>} : memref<8x1xf32, #tpu.memory_space<vmem>>, vector<8x1xf32>,
      %cst_16 = arith.constant 0.000000e+00 : f32
      %20 = vector.broadcast %cst_16 : f32 to vector<8x1xf32>
      %c0_17 = arith.constant 0 : index
      %c0_18 = arith.constant 0 : index
      %21 = vector.load %arg7[%c0_17, %c0_18] : memref<8x1xf32, #tpu.memory_space<vmem>>, vector<8x1xf32>
      tpu.vector_store %arg7[%c0_17, %c0_18], %20 {strides = array<i32>} : memref<8x1xf32, #tpu.memory_space<vmem>>, vector<8x1xf32>,
    } else {
    }
    %c0 = arith.constant 0 : index
    %c0_1 = arith.constant 0 : index
    %3 = vector.load %arg1[%c0, %c0_1] : memref<8x512xf32, #tpu.memory_space<vmem>>, vector<8x512xf32>
    %c0_2 = arith.constant 0 : index
    %c0_3 = arith.constant 0 : index
    %4 = vector.load %arg6[%c0_2, %c0_3] : memref<8x1xf32, #tpu.memory_space<vmem>>, vector<8x1xf32>
    %cst = arith.constant dense<0.000000e+00> : vector<8xf32>
    %5 = vector.multi_reduction <add>, %3, %cst [1] : vector<8x512xf32> to vector<8xf32>
    %6 = vector.shape_cast %5 : vector<8xf32> to vector<8x1xf32>
    %7 = arith.addf %4, %6 : vector<8x1xf32>
    %c0_4 = arith.constant 0 : index
    %c0_5 = arith.constant 0 : index
    %8 = vector.load %arg6[%c0_4, %c0_5] : memref<8x1xf32, #tpu.memory_space<vmem>>, vector<8x1xf32>
    tpu.vector_store %arg6[%c0_4, %c0_5], %7 {strides = array<i32>} : memref<8x1xf32, #tpu.memory_space<vmem>>, vector<8x1xf32>,
    %c0_6 = arith.constant 0 : index
    %c0_7 = arith.constant 0 : index
    %9 = vector.load %arg7[%c0_6, %c0_7] : memref<8x1xf32, #tpu.memory_space<vmem>>, vector<8x1xf32>
    %10 = arith.mulf %3, %3 : vector<8x512xf32>
    %cst_8 = arith.constant dense<0.000000e+00> : vector<8xf32>
    %11 = vector.multi_reduction <add>, %10, %cst_8 [1] : vector<8x512xf32> to vector<8xf32>
    %12 = vector.shape_cast %11 : vector<8xf32> to vector<8x1xf32>
    %13 = arith.addf %9, %12 : vector<8x1xf32>
    %c0_9 = arith.constant 0 : index
    %c0_10 = arith.constant 0 : index
    %14 = vector.load %arg7[%c0_9, %c0_10] : memref<8x1xf32, #tpu.memory_space<vmem>>, vector<8x1xf32>
    tpu.vector_store %arg7[%c0_9, %c0_10], %13 {strides = array<i32>} : memref<8x1xf32, #tpu.memory_space<vmem>>, vector<8x1xf32>,
    %c0_i32_11 = arith.constant 0 : i32
    %15 = arith.cmpi eq, %arg0, %c0_i32_11 : i32
    %16 = arith.extui %15 : i1 to i32
    %c0_i32_12 = arith.constant 0 : i32
    %17 = arith.cmpi ne, %16, %c0_i32_12 : i32
    scf.if %17 {
      %c0_13 = arith.constant 0 : index
      %c0_14 = arith.constant 0 : index
      %18 = vector.load %arg6[%c0_13, %c0_14] : memref<8x1xf32, #tpu.memory_space<vmem>>, vector<4x1xf32>
      %c0_15 = arith.constant 0 : index
      %c0_16 = arith.constant 0 : index
      %19 = vector.load %arg7[%c0_15, %c0_16] : memref<8x1xf32, #tpu.memory_space<vmem>>, vector<4x1xf32>
      %c4 = arith.constant 4 : index
      %c0_17 = arith.constant 0 : index
      %20 = vector.load %arg6[%c4, %c0_17] : memref<8x1xf32, #tpu.memory_space<vmem>>, vector<4x1xf32>
      %21 = arith.addf %18, %20 : vector<4x1xf32>
      %c4_18 = arith.constant 4 : index
      %c0_19 = arith.constant 0 : index
      %22 = vector.load %arg7[%c4_18, %c0_19] : memref<8x1xf32, #tpu.memory_space<vmem>>, vector<4x1xf32>
      %23 = arith.addf %19, %22 : vector<4x1xf32>
      %cst_20 = arith.constant 9.765625E-4 : f32
      %24 = vector.broadcast %cst_20 : f32 to vector<4x1xf32>
      %25 = arith.mulf %21, %24 : vector<4x1xf32>
      %cst_21 = arith.constant 9.765625E-4 : f32
      %26 = vector.broadcast %cst_21 : f32 to vector<4x1xf32>
      %27 = arith.mulf %23, %26 : vector<4x1xf32>
      %28 = arith.mulf %25, %25 : vector<4x1xf32>
      %29 = arith.subf %27, %28 : vector<4x1xf32>
      %c0_22 = arith.constant 0 : index
      %c0_23 = arith.constant 0 : index
      %30 = vector.load %arg2[%c0_22, %c0_23] : memref<4x1xf32, #tpu.memory_space<vmem>>, vector<4x1xf32>
      %cst_24 = arith.constant 9.99999974E-6 : f32
      %31 = vector.broadcast %cst_24 : f32 to vector<4x1xf32>
      %32 = arith.addf %29, %31 : vector<4x1xf32>
      %33 = math.rsqrt %32 : vector<4x1xf32>
      %34 = arith.mulf %30, %33 : vector<4x1xf32>
      %c0_25 = arith.constant 0 : index
      %c0_26 = arith.constant 0 : index
      %35 = vector.load %arg4[%c0_25, %c0_26] : memref<4x1xf32, #tpu.memory_space<vmem>>, vector<4x1xf32>
      tpu.vector_store %arg4[%c0_25, %c0_26], %34 {strides = array<i32>} : memref<4x1xf32, #tpu.memory_space<vmem>>, vector<4x1xf32>,
      %c0_27 = arith.constant 0 : index
      %c0_28 = arith.constant 0 : index
      %36 = vector.load %arg3[%c0_27, %c0_28] : memref<4x1xf32, #tpu.memory_space<vmem>>, vector<4x1xf32>
      %37 = arith.mulf %25, %34 : vector<4x1xf32>
      %38 = arith.subf %36, %37 : vector<4x1xf32>
      %c0_29 = arith.constant 0 : index
      %c0_30 = arith.constant 0 : index
      %39 = vector.load %arg5[%c0_29, %c0_30] : memref<4x1xf32, #tpu.memory_space<vmem>>, vector<4x1xf32>
      tpu.vector_store %arg5[%c0_29, %c0_30], %38 {strides = array<i32>} : memref<4x1xf32, #tpu.memory_space<vmem>>, vector<4x1xf32>,
    } else {
    }
    return
  }
  func.func @transform_0(%arg0: i32) -> (i32, i32) {
    %c0_i32 = arith.constant 0 : i32
    %c0_i32_0 = arith.constant 0 : i32
    return %arg0, %c0_i32 : i32, i32
  }
  func.func @transform_1(%arg0: i32) -> (i32, i32) {
    %c0_i32 = arith.constant 0 : i32
    %c0_i32_0 = arith.constant 0 : i32
    %c0_i32_1 = arith.constant 0 : i32
    return %c0_i32, %c0_i32_0 : i32, i32
  }
  func.func @transform_2(%arg0: i32) -> (i32, i32) {
    %c0_i32 = arith.constant 0 : i32
    %c0_i32_0 = arith.constant 0 : i32
    %c0_i32_1 = arith.constant 0 : i32
    return %c0_i32, %c0_i32_0 : i32, i32
  }
  func.func @transform_3(%arg0: i32) -> (i32, i32) {
    %c0_i32 = arith.constant 0 : i32
    %c0_i32_0 = arith.constant 0 : i32
    %c0_i32_1 = arith.constant 0 : i32
    return %c0_i32, %c0_i32_0 : i32, i32
  }
  func.func @transform_4(%arg0: i32) -> (i32, i32) {
    %c0_i32 = arith.constant 0 : i32
    %c0_i32_0 = arith.constant 0 : i32
    %c0_i32_1 = arith.constant 0 : i32
    return %c0_i32, %c0_i32_0 : i32, i32
  }
}

module attributes {stable_mosaic.version = 11 : i64} {
  func.func @bottleneck_conv_kernel(%arg0: i32, %arg1: memref<8x512xf32, #tpu.memory_space<vmem>>, %arg2: memref<8x1xf32, #tpu.memory_space<vmem>>, %arg3: memref<8x1xf32, #tpu.memory_space<vmem>>, %arg4: memref<8x216xf32, #tpu.memory_space<vmem>>, %arg5: memref<8x1xf32, #tpu.memory_space<vmem>>, %arg6: memref<32x512xf32, #tpu.memory_space<vmem>>, %arg7: memref<8x512xf32, #tpu.memory_space<vmem>>, %arg8: memref<216x512xf32, #tpu.memory_space<vmem>>) attributes {dimension_semantics = [#tpu.dimension_semantics<parallel>], iteration_bounds = array<i64: 1>, scalar_prefetch = 0 : i64, scratch_operands = 1 : i64, tpu.core_type = #tpu.core_type<tc>, window_params = [{transform_indices = @transform_0, window_bounds = array<i64: 8, 512>}, {pipeline_mode = #tpu.pipeline_mode<synchronous>, transform_indices = @transform_1, window_bounds = array<i64: 8, 1>}, {pipeline_mode = #tpu.pipeline_mode<synchronous>, transform_indices = @transform_2, window_bounds = array<i64: 8, 1>}, {pipeline_mode = #tpu.pipeline_mode<synchronous>, transform_indices = @transform_3, window_bounds = array<i64: 8, 216>}, {pipeline_mode = #tpu.pipeline_mode<synchronous>, transform_indices = @transform_4, window_bounds = array<i64: 8, 1>}, {pipeline_mode = #tpu.pipeline_mode<synchronous>, transform_indices = @transform_5, window_bounds = array<i64: 32, 512>}, {transform_indices = @transform_6, window_bounds = array<i64: 8, 512>}]} {
    %c0 = arith.constant 0 : index
    %c0_0 = arith.constant 0 : index
    %0 = vector.load %arg1[%c0, %c0_0] : memref<8x512xf32, #tpu.memory_space<vmem>>, vector<8x512xf32>
    %c0_1 = arith.constant 0 : index
    %c0_2 = arith.constant 0 : index
    %1 = vector.load %arg2[%c0_1, %c0_2] : memref<8x1xf32, #tpu.memory_space<vmem>>, vector<8x1xf32>
    %2 = vector.broadcast %1 : vector<8x1xf32> to vector<8x512xf32>
    %3 = arith.mulf %0, %2 : vector<8x512xf32>
    %c0_3 = arith.constant 0 : index
    %c0_4 = arith.constant 0 : index
    %4 = vector.load %arg3[%c0_3, %c0_4] : memref<8x1xf32, #tpu.memory_space<vmem>>, vector<8x1xf32>
    %5 = vector.broadcast %4 : vector<8x1xf32> to vector<8x512xf32>
    %6 = arith.addf %3, %5 : vector<8x512xf32>
    %cst = arith.constant 0.000000e+00 : f32
    %7 = vector.broadcast %cst : f32 to vector<8x512xf32>
    %8 = arith.maximumf %6, %7 : vector<8x512xf32>
    %c73_i32 = arith.constant 73 : i32
    %9 = tpu.dynamic_rotate %8 by %c73_i32 dim 1 : vector<8x512xf32>, i32 -> vector<8x512xf32>
    %c0_5 = arith.constant 0 : index
    %c0_6 = arith.constant 0 : index
    %10 = vector.load %arg6[%c0_5, %c0_6] : memref<32x512xf32, #tpu.memory_space<vmem>>, vector<1x512xf32>
    %11 = vector.broadcast %10 : vector<1x512xf32> to vector<8x512xf32>
    %12 = arith.mulf %9, %11 : vector<8x512xf32>
    %c0_7 = arith.constant 0 : index
    %c0_8 = arith.constant 0 : index
    %13 = vector.load %arg8[%c0_7, %c0_8] : memref<216x512xf32, #tpu.memory_space<vmem>>, vector<8x512xf32>
    tpu.vector_store %arg8[%c0_7, %c0_8], %12 {strides = array<i32>} : memref<216x512xf32, #tpu.memory_space<vmem>>, vector<8x512xf32>,
    %c72_i32 = arith.constant 72 : i32
    %14 = tpu.dynamic_rotate %8 by %c72_i32 dim 1 : vector<8x512xf32>, i32 -> vector<8x512xf32>
    %c1 = arith.constant 1 : index
    %c0_9 = arith.constant 0 : index
    %15 = vector.load %arg6[%c1, %c0_9] : memref<32x512xf32, #tpu.memory_space<vmem>>, vector<1x512xf32>
    %16 = vector.broadcast %15 : vector<1x512xf32> to vector<8x512xf32>
    %17 = arith.mulf %14, %16 : vector<8x512xf32>
    %c8 = arith.constant 8 : index
    %c0_10 = arith.constant 0 : index
    %18 = vector.load %arg8[%c8, %c0_10] : memref<216x512xf32, #tpu.memory_space<vmem>>, vector<8x512xf32>
    tpu.vector_store %arg8[%c8, %c0_10], %17 {strides = array<i32>} : memref<216x512xf32, #tpu.memory_space<vmem>>, vector<8x512xf32>,
    %c71_i32 = arith.constant 71 : i32
    %19 = tpu.dynamic_rotate %8 by %c71_i32 dim 1 : vector<8x512xf32>, i32 -> vector<8x512xf32>
    %c2 = arith.constant 2 : index
    %c0_11 = arith.constant 0 : index
    %20 = vector.load %arg6[%c2, %c0_11] : memref<32x512xf32, #tpu.memory_space<vmem>>, vector<1x512xf32>
    %21 = vector.broadcast %20 : vector<1x512xf32> to vector<8x512xf32>
    %22 = arith.mulf %19, %21 : vector<8x512xf32>
    %c16 = arith.constant 16 : index
    %c0_12 = arith.constant 0 : index
    %23 = vector.load %arg8[%c16, %c0_12] : memref<216x512xf32, #tpu.memory_space<vmem>>, vector<8x512xf32>
    tpu.vector_store %arg8[%c16, %c0_12], %22 {strides = array<i32>} : memref<216x512xf32, #tpu.memory_space<vmem>>, vector<8x512xf32>,
    %c65_i32 = arith.constant 65 : i32
    %24 = tpu.dynamic_rotate %8 by %c65_i32 dim 1 : vector<8x512xf32>, i32 -> vector<8x512xf32>
    %c3 = arith.constant 3 : index
    %c0_13 = arith.constant 0 : index
    %25 = vector.load %arg6[%c3, %c0_13] : memref<32x512xf32, #tpu.memory_space<vmem>>, vector<1x512xf32>
    %26 = vector.broadcast %25 : vector<1x512xf32> to vector<8x512xf32>
    %27 = arith.mulf %24, %26 : vector<8x512xf32>
    %c24 = arith.constant 24 : index
    %c0_14 = arith.constant 0 : index
    %28 = vector.load %arg8[%c24, %c0_14] : memref<216x512xf32, #tpu.memory_space<vmem>>, vector<8x512xf32>
    tpu.vector_store %arg8[%c24, %c0_14], %27 {strides = array<i32>} : memref<216x512xf32, #tpu.memory_space<vmem>>, vector<8x512xf32>,
    %c64_i32 = arith.constant 64 : i32
    %29 = tpu.dynamic_rotate %8 by %c64_i32 dim 1 : vector<8x512xf32>, i32 -> vector<8x512xf32>
    %c4 = arith.constant 4 : index
    %c0_15 = arith.constant 0 : index
    %30 = vector.load %arg6[%c4, %c0_15] : memref<32x512xf32, #tpu.memory_space<vmem>>, vector<1x512xf32>
    %31 = vector.broadcast %30 : vector<1x512xf32> to vector<8x512xf32>
    %32 = arith.mulf %29, %31 : vector<8x512xf32>
    %c32 = arith.constant 32 : index
    %c0_16 = arith.constant 0 : index
    %33 = vector.load %arg8[%c32, %c0_16] : memref<216x512xf32, #tpu.memory_space<vmem>>, vector<8x512xf32>
    tpu.vector_store %arg8[%c32, %c0_16], %32 {strides = array<i32>} : memref<216x512xf32, #tpu.memory_space<vmem>>, vector<8x512xf32>,
    %c63_i32 = arith.constant 63 : i32
    %34 = tpu.dynamic_rotate %8 by %c63_i32 dim 1 : vector<8x512xf32>, i32 -> vector<8x512xf32>
    %c5 = arith.constant 5 : index
    %c0_17 = arith.constant 0 : index
    %35 = vector.load %arg6[%c5, %c0_17] : memref<32x512xf32, #tpu.memory_space<vmem>>, vector<1x512xf32>
    %36 = vector.broadcast %35 : vector<1x512xf32> to vector<8x512xf32>
    %37 = arith.mulf %34, %36 : vector<8x512xf32>
    %c40 = arith.constant 40 : index
    %c0_18 = arith.constant 0 : index
    %38 = vector.load %arg8[%c40, %c0_18] : memref<216x512xf32, #tpu.memory_space<vmem>>, vector<8x512xf32>
    tpu.vector_store %arg8[%c40, %c0_18], %37 {strides = array<i32>} : memref<216x512xf32, #tpu.memory_space<vmem>>, vector<8x512xf32>,
    %c57_i32 = arith.constant 57 : i32
    %39 = tpu.dynamic_rotate %8 by %c57_i32 dim 1 : vector<8x512xf32>, i32 -> vector<8x512xf32>
    %c6 = arith.constant 6 : index
    %c0_19 = arith.constant 0 : index
    %40 = vector.load %arg6[%c6, %c0_19] : memref<32x512xf32, #tpu.memory_space<vmem>>, vector<1x512xf32>
    %41 = vector.broadcast %40 : vector<1x512xf32> to vector<8x512xf32>
    %42 = arith.mulf %39, %41 : vector<8x512xf32>
    %c48 = arith.constant 48 : index
    %c0_20 = arith.constant 0 : index
    %43 = vector.load %arg8[%c48, %c0_20] : memref<216x512xf32, #tpu.memory_space<vmem>>, vector<8x512xf32>
    tpu.vector_store %arg8[%c48, %c0_20], %42 {strides = array<i32>} : memref<216x512xf32, #tpu.memory_space<vmem>>, vector<8x512xf32>,
    %c56_i32 = arith.constant 56 : i32
    %44 = tpu.dynamic_rotate %8 by %c56_i32 dim 1 : vector<8x512xf32>, i32 -> vector<8x512xf32>
    %c7 = arith.constant 7 : index
    %c0_21 = arith.constant 0 : index
    %45 = vector.load %arg6[%c7, %c0_21] : memref<32x512xf32, #tpu.memory_space<vmem>>, vector<1x512xf32>
    %46 = vector.broadcast %45 : vector<1x512xf32> to vector<8x512xf32>
    %47 = arith.mulf %44, %46 : vector<8x512xf32>
    %c56 = arith.constant 56 : index
    %c0_22 = arith.constant 0 : index
    %48 = vector.load %arg8[%c56, %c0_22] : memref<216x512xf32, #tpu.memory_space<vmem>>, vector<8x512xf32>
    tpu.vector_store %arg8[%c56, %c0_22], %47 {strides = array<i32>} : memref<216x512xf32, #tpu.memory_space<vmem>>, vector<8x512xf32>,
    %c55_i32 = arith.constant 55 : i32
    %49 = tpu.dynamic_rotate %8 by %c55_i32 dim 1 : vector<8x512xf32>, i32 -> vector<8x512xf32>
    %c8_23 = arith.constant 8 : index
    %c0_24 = arith.constant 0 : index
    %50 = vector.load %arg6[%c8_23, %c0_24] : memref<32x512xf32, #tpu.memory_space<vmem>>, vector<1x512xf32>
    %51 = vector.broadcast %50 : vector<1x512xf32> to vector<8x512xf32>
    %52 = arith.mulf %49, %51 : vector<8x512xf32>
    %c64 = arith.constant 64 : index
    %c0_25 = arith.constant 0 : index
    %53 = vector.load %arg8[%c64, %c0_25] : memref<216x512xf32, #tpu.memory_space<vmem>>, vector<8x512xf32>
    tpu.vector_store %arg8[%c64, %c0_25], %52 {strides = array<i32>} : memref<216x512xf32, #tpu.memory_space<vmem>>, vector<8x512xf32>,
    %c9_i32 = arith.constant 9 : i32
    %54 = tpu.dynamic_rotate %8 by %c9_i32 dim 1 : vector<8x512xf32>, i32 -> vector<8x512xf32>
    %c9 = arith.constant 9 : index
    %c0_26 = arith.constant 0 : index
    %55 = vector.load %arg6[%c9, %c0_26] : memref<32x512xf32, #tpu.memory_space<vmem>>, vector<1x512xf32>
    %56 = vector.broadcast %55 : vector<1x512xf32> to vector<8x512xf32>
    %57 = arith.mulf %54, %56 : vector<8x512xf32>
    %c72 = arith.constant 72 : index
    %c0_27 = arith.constant 0 : index
    %58 = vector.load %arg8[%c72, %c0_27] : memref<216x512xf32, #tpu.memory_space<vmem>>, vector<8x512xf32>
    tpu.vector_store %arg8[%c72, %c0_27], %57 {strides = array<i32>} : memref<216x512xf32, #tpu.memory_space<vmem>>, vector<8x512xf32>,
    %c8_i32 = arith.constant 8 : i32
    %59 = tpu.dynamic_rotate %8 by %c8_i32 dim 1 : vector<8x512xf32>, i32 -> vector<8x512xf32>
    %c10 = arith.constant 10 : index
    %c0_28 = arith.constant 0 : index
    %60 = vector.load %arg6[%c10, %c0_28] : memref<32x512xf32, #tpu.memory_space<vmem>>, vector<1x512xf32>
    %61 = vector.broadcast %60 : vector<1x512xf32> to vector<8x512xf32>
    %62 = arith.mulf %59, %61 : vector<8x512xf32>
    %c80 = arith.constant 80 : index
    %c0_29 = arith.constant 0 : index
    %63 = vector.load %arg8[%c80, %c0_29] : memref<216x512xf32, #tpu.memory_space<vmem>>, vector<8x512xf32>
    tpu.vector_store %arg8[%c80, %c0_29], %62 {strides = array<i32>} : memref<216x512xf32, #tpu.memory_space<vmem>>, vector<8x512xf32>,
    %c7_i32 = arith.constant 7 : i32
    %64 = tpu.dynamic_rotate %8 by %c7_i32 dim 1 : vector<8x512xf32>, i32 -> vector<8x512xf32>
    %c11 = arith.constant 11 : index
    %c0_30 = arith.constant 0 : index
    %65 = vector.load %arg6[%c11, %c0_30] : memref<32x512xf32, #tpu.memory_space<vmem>>, vector<1x512xf32>
    %66 = vector.broadcast %65 : vector<1x512xf32> to vector<8x512xf32>
    %67 = arith.mulf %64, %66 : vector<8x512xf32>
    %c88 = arith.constant 88 : index
    %c0_31 = arith.constant 0 : index
    %68 = vector.load %arg8[%c88, %c0_31] : memref<216x512xf32, #tpu.memory_space<vmem>>, vector<8x512xf32>
    tpu.vector_store %arg8[%c88, %c0_31], %67 {strides = array<i32>} : memref<216x512xf32, #tpu.memory_space<vmem>>, vector<8x512xf32>,
    %c1_i32 = arith.constant 1 : i32
    %69 = tpu.dynamic_rotate %8 by %c1_i32 dim 1 : vector<8x512xf32>, i32 -> vector<8x512xf32>
    %c12 = arith.constant 12 : index
    %c0_32 = arith.constant 0 : index
    %70 = vector.load %arg6[%c12, %c0_32] : memref<32x512xf32, #tpu.memory_space<vmem>>, vector<1x512xf32>
    %71 = vector.broadcast %70 : vector<1x512xf32> to vector<8x512xf32>
    %72 = arith.mulf %69, %71 : vector<8x512xf32>
    %c96 = arith.constant 96 : index
    %c0_33 = arith.constant 0 : index
    %73 = vector.load %arg8[%c96, %c0_33] : memref<216x512xf32, #tpu.memory_space<vmem>>, vector<8x512xf32>
    tpu.vector_store %arg8[%c96, %c0_33], %72 {strides = array<i32>} : memref<216x512xf32, #tpu.memory_space<vmem>>, vector<8x512xf32>,
    %c104 = arith.constant 104 : index
    %c0_34 = arith.constant 0 : index
    %74 = vector.load %arg8[%c104, %c0_34] : memref<216x512xf32, #tpu.memory_space<vmem>>, vector<8x512xf32>
    tpu.vector_store %arg8[%c104, %c0_34], %8 {strides = array<i32>} : memref<216x512xf32, #tpu.memory_space<vmem>>, vector<8x512xf32>,
    %c511_i32 = arith.constant 511 : i32
    %75 = tpu.dynamic_rotate %8 by %c511_i32 dim 1 : vector<8x512xf32>, i32 -> vector<8x512xf32>
    %c14 = arith.constant 14 : index
    %c0_35 = arith.constant 0 : index
    %76 = vector.load %arg6[%c14, %c0_35] : memref<32x512xf32, #tpu.memory_space<vmem>>, vector<1x512xf32>
    %77 = vector.broadcast %76 : vector<1x512xf32> to vector<8x512xf32>
    %78 = arith.mulf %75, %77 : vector<8x512xf32>
    %c112 = arith.constant 112 : index
    %c0_36 = arith.constant 0 : index
    %79 = vector.load %arg8[%c112, %c0_36] : memref<216x512xf32, #tpu.memory_space<vmem>>, vector<8x512xf32>
    tpu.vector_store %arg8[%c112, %c0_36], %78 {strides = array<i32>} : memref<216x512xf32, #tpu.memory_space<vmem>>, vector<8x512xf32>,
    %c505_i32 = arith.constant 505 : i32
    %80 = tpu.dynamic_rotate %8 by %c505_i32 dim 1 : vector<8x512xf32>, i32 -> vector<8x512xf32>
    %c15 = arith.constant 15 : index
    %c0_37 = arith.constant 0 : index
    %81 = vector.load %arg6[%c15, %c0_37] : memref<32x512xf32, #tpu.memory_space<vmem>>, vector<1x512xf32>
    %82 = vector.broadcast %81 : vector<1x512xf32> to vector<8x512xf32>
    %83 = arith.mulf %80, %82 : vector<8x512xf32>
    %c120 = arith.constant 120 : index
    %c0_38 = arith.constant 0 : index
    %84 = vector.load %arg8[%c120, %c0_38] : memref<216x512xf32, #tpu.memory_space<vmem>>, vector<8x512xf32>
    tpu.vector_store %arg8[%c120, %c0_38], %83 {strides = array<i32>} : memref<216x512xf32, #tpu.memory_space<vmem>>, vector<8x512xf32>,
    %c504_i32 = arith.constant 504 : i32
    %85 = tpu.dynamic_rotate %8 by %c504_i32 dim 1 : vector<8x512xf32>, i32 -> vector<8x512xf32>
    %c16_39 = arith.constant 16 : index
    %c0_40 = arith.constant 0 : index
    %86 = vector.load %arg6[%c16_39, %c0_40] : memref<32x512xf32, #tpu.memory_space<vmem>>, vector<1x512xf32>
    %87 = vector.broadcast %86 : vector<1x512xf32> to vector<8x512xf32>
    %88 = arith.mulf %85, %87 : vector<8x512xf32>
    %c128 = arith.constant 128 : index
    %c0_41 = arith.constant 0 : index
    %89 = vector.load %arg8[%c128, %c0_41] : memref<216x512xf32, #tpu.memory_space<vmem>>, vector<8x512xf32>
    tpu.vector_store %arg8[%c128, %c0_41], %88 {strides = array<i32>} : memref<216x512xf32, #tpu.memory_space<vmem>>, vector<8x512xf32>,
    %c503_i32 = arith.constant 503 : i32
    %90 = tpu.dynamic_rotate %8 by %c503_i32 dim 1 : vector<8x512xf32>, i32 -> vector<8x512xf32>
    %c17 = arith.constant 17 : index
    %c0_42 = arith.constant 0 : index
    %91 = vector.load %arg6[%c17, %c0_42] : memref<32x512xf32, #tpu.memory_space<vmem>>, vector<1x512xf32>
    %92 = vector.broadcast %91 : vector<1x512xf32> to vector<8x512xf32>
    %93 = arith.mulf %90, %92 : vector<8x512xf32>
    %c136 = arith.constant 136 : index
    %c0_43 = arith.constant 0 : index
    %94 = vector.load %arg8[%c136, %c0_43] : memref<216x512xf32, #tpu.memory_space<vmem>>, vector<8x512xf32>
    tpu.vector_store %arg8[%c136, %c0_43], %93 {strides = array<i32>} : memref<216x512xf32, #tpu.memory_space<vmem>>, vector<8x512xf32>,
    %c457_i32 = arith.constant 457 : i32
    %95 = tpu.dynamic_rotate %8 by %c457_i32 dim 1 : vector<8x512xf32>, i32 -> vector<8x512xf32>
    %c18 = arith.constant 18 : index
    %c0_44 = arith.constant 0 : index
    %96 = vector.load %arg6[%c18, %c0_44] : memref<32x512xf32, #tpu.memory_space<vmem>>, vector<1x512xf32>
    %97 = vector.broadcast %96 : vector<1x512xf32> to vector<8x512xf32>
    %98 = arith.mulf %95, %97 : vector<8x512xf32>
    %c144 = arith.constant 144 : index
    %c0_45 = arith.constant 0 : index
    %99 = vector.load %arg8[%c144, %c0_45] : memref<216x512xf32, #tpu.memory_space<vmem>>, vector<8x512xf32>
    tpu.vector_store %arg8[%c144, %c0_45], %98 {strides = array<i32>} : memref<216x512xf32, #tpu.memory_space<vmem>>, vector<8x512xf32>,
    %c456_i32 = arith.constant 456 : i32
    %100 = tpu.dynamic_rotate %8 by %c456_i32 dim 1 : vector<8x512xf32>, i32 -> vector<8x512xf32>
    %c19 = arith.constant 19 : index
    %c0_46 = arith.constant 0 : index
    %101 = vector.load %arg6[%c19, %c0_46] : memref<32x512xf32, #tpu.memory_space<vmem>>, vector<1x512xf32>
    %102 = vector.broadcast %101 : vector<1x512xf32> to vector<8x512xf32>
    %103 = arith.mulf %100, %102 : vector<8x512xf32>
    %c152 = arith.constant 152 : index
    %c0_47 = arith.constant 0 : index
    %104 = vector.load %arg8[%c152, %c0_47] : memref<216x512xf32, #tpu.memory_space<vmem>>, vector<8x512xf32>
    tpu.vector_store %arg8[%c152, %c0_47], %103 {strides = array<i32>} : memref<216x512xf32, #tpu.memory_space<vmem>>, vector<8x512xf32>,
    %c455_i32 = arith.constant 455 : i32
    %105 = tpu.dynamic_rotate %8 by %c455_i32 dim 1 : vector<8x512xf32>, i32 -> vector<8x512xf32>
    %c20 = arith.constant 20 : index
    %c0_48 = arith.constant 0 : index
    %106 = vector.load %arg6[%c20, %c0_48] : memref<32x512xf32, #tpu.memory_space<vmem>>, vector<1x512xf32>
    %107 = vector.broadcast %106 : vector<1x512xf32> to vector<8x512xf32>
    %108 = arith.mulf %105, %107 : vector<8x512xf32>
    %c160 = arith.constant 160 : index
    %c0_49 = arith.constant 0 : index
    %109 = vector.load %arg8[%c160, %c0_49] : memref<216x512xf32, #tpu.memory_space<vmem>>, vector<8x512xf32>
    tpu.vector_store %arg8[%c160, %c0_49], %108 {strides = array<i32>} : memref<216x512xf32, #tpu.memory_space<vmem>>, vector<8x512xf32>,
    %c449_i32 = arith.constant 449 : i32
    %110 = tpu.dynamic_rotate %8 by %c449_i32 dim 1 : vector<8x512xf32>, i32 -> vector<8x512xf32>
    %c21 = arith.constant 21 : index
    %c0_50 = arith.constant 0 : index
    %111 = vector.load %arg6[%c21, %c0_50] : memref<32x512xf32, #tpu.memory_space<vmem>>, vector<1x512xf32>
    %112 = vector.broadcast %111 : vector<1x512xf32> to vector<8x512xf32>
    %113 = arith.mulf %110, %112 : vector<8x512xf32>
    %c168 = arith.constant 168 : index
    %c0_51 = arith.constant 0 : index
    %114 = vector.load %arg8[%c168, %c0_51] : memref<216x512xf32, #tpu.memory_space<vmem>>, vector<8x512xf32>
    tpu.vector_store %arg8[%c168, %c0_51], %113 {strides = array<i32>} : memref<216x512xf32, #tpu.memory_space<vmem>>, vector<8x512xf32>,
    %c448_i32 = arith.constant 448 : i32
    %115 = tpu.dynamic_rotate %8 by %c448_i32 dim 1 : vector<8x512xf32>, i32 -> vector<8x512xf32>
    %c22 = arith.constant 22 : index
    %c0_52 = arith.constant 0 : index
    %116 = vector.load %arg6[%c22, %c0_52] : memref<32x512xf32, #tpu.memory_space<vmem>>, vector<1x512xf32>
    %117 = vector.broadcast %116 : vector<1x512xf32> to vector<8x512xf32>
    %118 = arith.mulf %115, %117 : vector<8x512xf32>
    %c176 = arith.constant 176 : index
    %c0_53 = arith.constant 0 : index
    %119 = vector.load %arg8[%c176, %c0_53] : memref<216x512xf32, #tpu.memory_space<vmem>>, vector<8x512xf32>
    tpu.vector_store %arg8[%c176, %c0_53], %118 {strides = array<i32>} : memref<216x512xf32, #tpu.memory_space<vmem>>, vector<8x512xf32>,
    %c447_i32 = arith.constant 447 : i32
    %120 = tpu.dynamic_rotate %8 by %c447_i32 dim 1 : vector<8x512xf32>, i32 -> vector<8x512xf32>
    %c23 = arith.constant 23 : index
    %c0_54 = arith.constant 0 : index
    %121 = vector.load %arg6[%c23, %c0_54] : memref<32x512xf32, #tpu.memory_space<vmem>>, vector<1x512xf32>
    %122 = vector.broadcast %121 : vector<1x512xf32> to vector<8x512xf32>
    %123 = arith.mulf %120, %122 : vector<8x512xf32>
    %c184 = arith.constant 184 : index
    %c0_55 = arith.constant 0 : index
    %124 = vector.load %arg8[%c184, %c0_55] : memref<216x512xf32, #tpu.memory_space<vmem>>, vector<8x512xf32>
    tpu.vector_store %arg8[%c184, %c0_55], %123 {strides = array<i32>} : memref<216x512xf32, #tpu.memory_space<vmem>>, vector<8x512xf32>,
    %c441_i32 = arith.constant 441 : i32
    %125 = tpu.dynamic_rotate %8 by %c441_i32 dim 1 : vector<8x512xf32>, i32 -> vector<8x512xf32>
    %c24_56 = arith.constant 24 : index
    %c0_57 = arith.constant 0 : index
    %126 = vector.load %arg6[%c24_56, %c0_57] : memref<32x512xf32, #tpu.memory_space<vmem>>, vector<1x512xf32>
    %127 = vector.broadcast %126 : vector<1x512xf32> to vector<8x512xf32>
    %128 = arith.mulf %125, %127 : vector<8x512xf32>
    %c192 = arith.constant 192 : index
    %c0_58 = arith.constant 0 : index
    %129 = vector.load %arg8[%c192, %c0_58] : memref<216x512xf32, #tpu.memory_space<vmem>>, vector<8x512xf32>
    tpu.vector_store %arg8[%c192, %c0_58], %128 {strides = array<i32>} : memref<216x512xf32, #tpu.memory_space<vmem>>, vector<8x512xf32>,
    %c440_i32 = arith.constant 440 : i32
    %130 = tpu.dynamic_rotate %8 by %c440_i32 dim 1 : vector<8x512xf32>, i32 -> vector<8x512xf32>
    %c25 = arith.constant 25 : index
    %c0_59 = arith.constant 0 : index
    %131 = vector.load %arg6[%c25, %c0_59] : memref<32x512xf32, #tpu.memory_space<vmem>>, vector<1x512xf32>
    %132 = vector.broadcast %131 : vector<1x512xf32> to vector<8x512xf32>
    %133 = arith.mulf %130, %132 : vector<8x512xf32>
    %c200 = arith.constant 200 : index
    %c0_60 = arith.constant 0 : index
    %134 = vector.load %arg8[%c200, %c0_60] : memref<216x512xf32, #tpu.memory_space<vmem>>, vector<8x512xf32>
    tpu.vector_store %arg8[%c200, %c0_60], %133 {strides = array<i32>} : memref<216x512xf32, #tpu.memory_space<vmem>>, vector<8x512xf32>,
    %c439_i32 = arith.constant 439 : i32
    %135 = tpu.dynamic_rotate %8 by %c439_i32 dim 1 : vector<8x512xf32>, i32 -> vector<8x512xf32>
    %c26 = arith.constant 26 : index
    %c0_61 = arith.constant 0 : index
    %136 = vector.load %arg6[%c26, %c0_61] : memref<32x512xf32, #tpu.memory_space<vmem>>, vector<1x512xf32>
    %137 = vector.broadcast %136 : vector<1x512xf32> to vector<8x512xf32>
    %138 = arith.mulf %135, %137 : vector<8x512xf32>
    %c208 = arith.constant 208 : index
    %c0_62 = arith.constant 0 : index
    %139 = vector.load %arg8[%c208, %c0_62] : memref<216x512xf32, #tpu.memory_space<vmem>>, vector<8x512xf32>
    tpu.vector_store %arg8[%c208, %c0_62], %138 {strides = array<i32>} : memref<216x512xf32, #tpu.memory_space<vmem>>, vector<8x512xf32>,
    %c0_63 = arith.constant 0 : index
    %c0_64 = arith.constant 0 : index
    %140 = vector.load %arg4[%c0_63, %c0_64] : memref<8x216xf32, #tpu.memory_space<vmem>>, vector<8x216xf32>
    %c0_65 = arith.constant 0 : index
    %c0_66 = arith.constant 0 : index
    %141 = vector.load %arg8[%c0_65, %c0_66] : memref<216x512xf32, #tpu.memory_space<vmem>>, vector<216x512xf32>
    %cst_67 = arith.constant dense<0.000000e+00> : vector<8x512xf32>
    %142 = tpu.matmul %140, %141, %cst_67 {dimension_numbers = #tpu.dot_dimension_numbers<[1], [0], [0], [1], [0, 0, 1, 1], [], []>} : vector<8x216xf32>, vector<216x512xf32>, vector<8x512xf32> -> vector<8x512xf32>
    %c0_68 = arith.constant 0 : index
    %c0_69 = arith.constant 0 : index
    %143 = vector.load %arg5[%c0_68, %c0_69] : memref<8x1xf32, #tpu.memory_space<vmem>>, vector<8x1xf32>
    %144 = vector.broadcast %143 : vector<8x1xf32> to vector<8x512xf32>
    %145 = arith.addf %142, %144 : vector<8x512xf32>
    %146 = arith.addf %145, %0 : vector<8x512xf32>
    %c0_70 = arith.constant 0 : index
    %c0_71 = arith.constant 0 : index
    %147 = vector.load %arg7[%c0_70, %c0_71] : memref<8x512xf32, #tpu.memory_space<vmem>>, vector<8x512xf32>
    tpu.vector_store %arg7[%c0_70, %c0_71], %146 {strides = array<i32>} : memref<8x512xf32, #tpu.memory_space<vmem>>, vector<8x512xf32>,
    return
  }
  func.func @transform_0(%arg0: i32) -> (i32, i32) {
    %c0_i32 = arith.constant 0 : i32
    %c0_i32_0 = arith.constant 0 : i32
    return %arg0, %c0_i32 : i32, i32
  }
  func.func @transform_1(%arg0: i32) -> (i32, i32) {
    %c0_i32 = arith.constant 0 : i32
    %c0_i32_0 = arith.constant 0 : i32
    %c0_i32_1 = arith.constant 0 : i32
    return %c0_i32, %c0_i32_0 : i32, i32
  }
  func.func @transform_2(%arg0: i32) -> (i32, i32) {
    %c0_i32 = arith.constant 0 : i32
    %c0_i32_0 = arith.constant 0 : i32
    %c0_i32_1 = arith.constant 0 : i32
    return %c0_i32, %c0_i32_0 : i32, i32
  }
  func.func @transform_3(%arg0: i32) -> (i32, i32) {
    %c0_i32 = arith.constant 0 : i32
    %c0_i32_0 = arith.constant 0 : i32
    %c0_i32_1 = arith.constant 0 : i32
    return %c0_i32, %c0_i32_0 : i32, i32
  }
  func.func @transform_4(%arg0: i32) -> (i32, i32) {
    %c0_i32 = arith.constant 0 : i32
    %c0_i32_0 = arith.constant 0 : i32
    %c0_i32_1 = arith.constant 0 : i32
    return %c0_i32, %c0_i32_0 : i32, i32
  }
  func.func @transform_5(%arg0: i32) -> (i32, i32) {
    %c0_i32 = arith.constant 0 : i32
    %c0_i32_0 = arith.constant 0 : i32
    %c0_i32_1 = arith.constant 0 : i32
    return %c0_i32, %c0_i32_0 : i32, i32
  }
  func.func @transform_6(%arg0: i32) -> (i32, i32) {
    %c0_i32 = arith.constant 0 : i32
    %c0_i32_0 = arith.constant 0 : i32
    return %arg0, %c0_i32 : i32, i32
  }
}

</mosaic_0001>

<bundles_post_ra>
// kernel: bottleneck_forward.2
= control target key start
LH: loop header
LB: loop body
LE: loop exit
PB: predicated region body
PF: predicated region fallthrough
CT: control target
= control target key end

     0   :  { %vm20_vm0 = vcmask 7168   ;;  %v82_v3 = vmov 0.0   ;;  %vm65_vm1 = vcmask 3072   ;;  %s136_s0 = inlined_call_operand.vmem [shape: f32[8,512], index: 0, kind: input, shape index: {}]   ;;  %s137_s1 = inlined_call_operand.vmem [shape: f32[4,1], index: 1, kind: input, shape index: {}]   ;;  %s138_s2 = inlined_call_operand.vmem [shape: f32[4,1], index: 2, kind: input, shape index: {}]   ;;  %s139_s3 = inlined_call_operand.vmem [shape: f32[4,1], index: 3, kind: output, shape index: {0}]   ;;  %s140_s4 = inlined_call_operand.vmem [shape: f32[4,1], index: 4, kind: output, shape index: {1}]  }
   0x1   :  { %v23_v0 = vld [vmem:[%s136_s0] sm:$0xff]  ;;  %v24_v1 = vld [vmem:[%s136_s0 + $0x8] sm:$0xff]  ;;  %v25_v2 = vld [vmem:[%s136_s0 + $0x10] sm:$0xff]  ;;  %21 = vst.msk [vmem:[#allocation2] sm:$0xff] %vm20_vm0, %v82_v3 }
   0x2   :  { %22 = vst.msk [vmem:[#allocation3] sm:$0xff] %vm20_vm0, %v82_v3  ;;  %v28_v4 = vadd.f32 %v24_v1, %v23_v0  ;;  %v37_v5 = vmul.f32 %v23_v0, %v23_v0  ;;  %v38_v6 = vmul.f32 %v24_v1, %v24_v1  ;;  %v39_v7 = vmul.f32 %v25_v2, %v25_v2  ;;  %v26_v8 = vld [vmem:[%s136_s0 + $0x18] sm:$0xff]  ;;  %v61_v32 = vld [vmem:[%s137_s1] sm:$0xf] }
   0x3   :  { %v40_v10 = vmul.f32 %v26_v8, %v26_v8  ;;  %v67_v35 = vld [vmem:[%s138_s2] sm:$0xf] }
   0x4   :  { %v29_v9 = vadd.f32 %v28_v4, %v25_v2  ;;  %v41_v11 = vadd.f32 %v38_v6, %v37_v5 }
   0x6   :  { %v30_v12 = vadd.f32 %v29_v9, %v26_v8  ;;  %v42_v13 = vadd.f32 %v41_v11, %v39_v7 }
   0x8   :  { %31 = vadd.xlane.f32.xlu0 %v30_v12  ;;  %v43_v14 = vadd.f32 %v42_v13, %v40_v10  ;;  %v27_v15 = vld [vmem:[#allocation2] sm:$0xff] }
   0x9   :  { %v36_v18 = vld [vmem:[#allocation3] sm:$0xff] }
   0xc   :  { %44 = vadd.xlane.f32.xlu0 %v43_v14 }
  0x95   :  { %v32_v16 = vpop.xlane.xlu0 %31 }
  0x96   :  { %v33_v17 = vadd.f32 %v32_v16, %v27_v15 }
  0x98   :  { %35 = vst.msk [vmem:[#allocation2] sm:$0xff] %vm20_vm0, %v33_v17 }
  0x99   :  { %v45_v19 = vpop.xlane.xlu0 %44 }
  0x9a   :  { %v46_v20 = vadd.f32 %v45_v19, %v36_v18 }
  0x9c   :  { %47 = vst.msk [vmem:[#allocation3] sm:$0xff] %vm20_vm0, %v46_v20 }
  0x9f   :  { %v51_v21 = vld [vmem:[#allocation2] sm:$0xf]  ;;  %v53_v22 = vld [vmem:[#allocation2 + $0x4] sm:$0xf] }
  0xa0   :  { %v54_v23 = vadd.f32 %v53_v22, %v51_v21 }
  0xa2   :  { %v57_v24 = vmul.f32 0.0009765625, %v54_v23 }
  0xa3   :  { %v52_v25 = vld [vmem:[#allocation3] sm:$0xf]  ;;  %v55_v26 = vld [vmem:[#allocation3 + $0x4] sm:$0xf] }
  0xa4   :  { %v56_v27 = vadd.f32 %v55_v26, %v52_v25  ;;  %v59_v28 = vmul.f32 %v57_v24, %v57_v24 }
  0xa6   :  { %v58_v29 = vmul.f32 0.0009765625, %v56_v27 }
  0xa8   :  { %v60_v30 = vsub.f32 %v58_v29, %v59_v28 }
  0xaa   :  { %v62_v31 = vadd.f32 1e-05, %v60_v30 }
  0xac   :  { %80 = vrsqrt.f32 %v62_v31 }
  0xb6   :  { %v81_v33 = vpop.eup %80 }
  0xb7   :  { %v64_v34 = vmul.f32 %v81_v33, %v61_v32 }
  0xb9   :  { %66 = vst.msk [vmem:[%s139_s3] sm:$0xf] %vm65_vm1, %v64_v34  ;;  %v68_v36 = vmul.f32 %v64_v34, %v57_v24 }
  0xbb   :  { %v69_v37 = vsub.f32 %v67_v35, %v68_v36 }
  0xbd   :  { %70 = vst.msk [vmem:[%s140_s4] sm:$0xf] %vm65_vm1, %v69_v37 }

// kernel: bottleneck_forward.3
= control target key start
LH: loop header
LB: loop body
LE: loop exit
PB: predicated region body
PF: predicated region fallthrough
CT: control target
= control target key end

     0   :  { %v1511_v0 = vmov 0   ;;  %s1512_s7 = smov 73   ;;  %s1513_s8 = smov 72   ;;  %v59_v21 = vlaneseq  ;;  %vm1199_vm4 = vcmask 719872   ;;  %s2244_s1 = inlined_call_operand.vmem [shape: f32[8,1], index: 1, kind: input, shape index: {}]   ;;  %s2245_s2 = inlined_call_operand.vmem [shape: f32[8,1], index: 2, kind: input, shape index: {}]   ;;  %s2246_s0 = inlined_call_operand.vmem [shape: f32[8,512], index: 0, kind: input, shape index: {}]   ;;  %s2247_s5 = inlined_call_operand.vmem [shape: f32[32,512], index: 5, kind: input, shape index: {}]   ;;  %s2248_s4 = inlined_call_operand.vmem [shape: f32[8,1], index: 4, kind: input, shape index: {}]   ;;  %s2249_s3 = inlined_call_operand.vmem [shape: f32[8,216], index: 3, kind: input, shape index: {}]   ;;  %s2250_s6 = inlined_call_operand.vmem [shape: f32[8,512], index: 6, kind: output, shape index: {}]  }
   0x1   :  { %1506 = vset.pattern.permute.xlu0 %v1511_v0  ;;  %v27_v1 = vld [vmem:[%s2244_s1] sm:$0xff]  ;;  %v25_v5 = vld [vmem:[%s2246_s0 + $0x10] sm:$0xff]  ;;  %v24_v6 = vld [vmem:[%s2246_s0 + $0x8] sm:$0xff]  ;;  %s1514_s9 = smov 71   ;;  %s1515_s10 = smov 65  }
   0x2   :  { %30 = vperm.xlu0 %1506, %v27_v1   ;;  %v37_v2 = vld [vmem:[%s2245_s2] sm:$0xff]  ;;  %v26_v13 = vld [vmem:[%s2246_s0 + $0x18] sm:$0xff]  ;;  %s1516_s11 = smov 64   ;;  %s1517_s12 = smov 63   ;;  %v69_v24 = vshrl.u32 %v59_v21, 7  ;;  %v1651_v25 = vand.u32 127, %v59_v21 }
   0x3   :  { %v23_v4 = vld [vmem:[%s2246_s0] sm:$0xff]  ;;  %s1518_s13 = smov 57   ;;  %s1519_s14 = smov 56  }
   0x4   :  { %s1520_s15 = smov 55   ;;  %s1521_s16 = smov 9   ;;  %v1658_v27 = vld [vmem:[%s2247_s5] ss:$8 sm:$0xf]  ;;  %v1660_v28 = vsub.s32 0, %v69_v24 }
   0x5   :  { %s1522_s17 = smov 8   ;;  %s1523_s18 = smov 7   ;;  %v1662_v29 = vsub.s32 1, %v69_v24  ;;  %v1664_v30 = vsub.s32 2, %v69_v24  ;;  %v1669_v33 = vsub.s32 3, %v69_v24  ;;  %vm61_vm0 = vcmp.lt.s32.totalorder %v1651_v25, 73 }
   0x6   :  { %40 = vperm.xlu0 %1506, %v37_v2   ;;  %s1524_s19 = smov 1   ;;  %s1525_s20 = smov 127   ;;  %v1373_v32 = vld [vmem:[%s2247_s5 + $0x42] ss:$8 sm:$0xf]  ;;  %v71_v41 = vrot.slane %v1658_v27, %v1660_v28  ;;  %vm104_vm1 = vcmp.lt.s32.totalorder %v1651_v25, 72 }
   0x7   :  { %s1526_s21 = smov 121   ;;  %s1527_s22 = smov 120   ;;  %v1374_v34 = vld [vmem:[%s2247_s5 + $0x43] ss:$8 sm:$0xf]  ;;  %v79_v35 = vrot.slane %v1658_v27, %v1664_v30  ;;  %v810_v36 = vrot.slane %v1373_v32, %v1660_v28  ;;  %v814_v37 = vrot.slane %v1373_v32, %v1662_v29  ;;  %v818_v42 = vrot.slane %v1373_v32, %v1664_v30 }
   0x8   :  { %v1357_v40 = vld [vmem:[%s2247_s5 + $0x1] ss:$8 sm:$0xf]  ;;  %v822_v43 = vrot.slane %v1373_v32, %v1669_v33  ;;  %v75_v44 = vrot.slane %v1658_v27, %v1662_v29  ;;  %s1528_s1 = smov 119   ;;  %v841_v46 = vrot.slane %v1374_v34, %v1660_v28  ;;  %v845_v47 = vrot.slane %v1374_v34, %v1662_v29 }
   0x9   :  { %v123_v49 = vrot.slane %v1357_v40, %v1664_v30  ;;  %v119_v50 = vrot.slane %v1357_v40, %v1662_v29  ;;  %v83_v51 = vrot.slane %v1658_v27, %v1669_v33  ;;  %v115_v55 = vrot.slane %v1357_v40, %v1660_v28  ;;  %v1193_v2 = vld [vmem:[%s2248_s4] sm:$0xff] }
   0xa   :  { %v849_v56 = vrot.slane %v1374_v34, %v1664_v30  ;;  %v853_v57 = vrot.slane %v1374_v34, %v1669_v33  ;;  %vm148_vm2 = vcmp.lt.s32.totalorder %v1651_v25, 71  ;;  %vm192_vm3 = vcmp.lt.s32.totalorder %v1651_v25, 65 }
   0xb   :  { %vm236_vm5 = vcmp.lt.s32.totalorder %v1651_v25, 64  ;;  %vm280_vm6 = vcmp.lt.s32.totalorder %v1651_v25, 63  ;;  %vm324_vm7 = vcmp.lt.s32.totalorder %v1651_v25, 57  ;;  %vm368_vm8 = vcmp.lt.s32.totalorder %v1651_v25, 56 }
   0xc   :  { %vm412_vm9 = vcmp.lt.s32.totalorder %v1651_v25, 55  ;;  %vm456_vm10 = vcmp.lt.s32.totalorder %v1651_v25, 9  ;;  %vm500_vm11 = vcmp.lt.s32.totalorder %v1651_v25, 8  ;;  %vm544_vm12 = vcmp.lt.s32.totalorder %v1651_v25, 7 }
   0xd   :  { %vm588_vm13 = vcmp.lt.s32.totalorder %v1651_v25, 1  ;;  %vm636_vm14 = vcmp.lt.s32.totalorder %v1651_v25, 127  ;;  %vm680_vm15 = vcmp.lt.s32.totalorder %v1651_v25, 121 }
  0x81   :  { %v31_v3 = vpop.permute.xlu0 %30 }
  0x82   :  { %v33_v7 = vmul.f32 %v31_v3, %v23_v4  ;;  %v35_v8 = vmul.f32 %v31_v3, %v25_v5  ;;  %v34_v10 = vmul.f32 %v31_v3, %v24_v6  ;;  %v36_v17 = vmul.f32 %v31_v3, %v26_v13 }
  0x83   :  { %v127_v5 = vrot.slane %v1357_v40, %v1669_v33  ;;  %v1359_v40 = vld [vmem:[%s2247_s5 + $0x3] ss:$8 sm:$0xf] }
  0x85   :  { %v41_v9 = vpop.permute.xlu0 %40 }
  0x86   :  { %v43_v11 = vadd.f32 %v41_v9, %v33_v7  ;;  %v45_v12 = vadd.f32 %v41_v9, %v35_v8  ;;  %v44_v14 = vadd.f32 %v41_v9, %v34_v10  ;;  %v46_v18 = vadd.f32 %v41_v9, %v36_v17 }
  0x88   :  { %v1582_v15 = vmax.f32 %v43_v11, 0.0  ;;  %v1584_v16 = vmax.f32 %v45_v12, 0.0  ;;  %v1588_v19 = vmax.f32 %v44_v14, 0.0  ;;  %v1592_v20 = vmax.f32 %v46_v18, 0.0 }
  0x8a   :  { %55 = vrot.lane.b32.xlu0 %v1584_v16, %s1512_s7  ;;  %51 = vrot.lane.b32.xlu1 %v1582_v15, %s1512_s7 }
  0x8e   :  { %96 = vrot.lane.b32.xlu0 %v1582_v15, %s1513_s8  ;;  %53 = vrot.lane.b32.xlu1 %v1588_v19, %s1512_s7 }
  0x92   :  { %100 = vrot.lane.b32.xlu0 %v1584_v16, %s1513_s8  ;;  %57 = vrot.lane.b32.xlu1 %v1592_v20, %s1512_s7 }
  0x96   :  { %140 = vrot.lane.b32.xlu0 %v1582_v15, %s1514_s9  ;;  %98 = vrot.lane.b32.xlu1 %v1588_v19, %s1513_s8 }
  0x9a   :  { %144 = vrot.lane.b32.xlu0 %v1584_v16, %s1514_s9  ;;  %102 = vrot.lane.b32.xlu1 %v1592_v20, %s1513_s8 }
  0x9e   :  { %184 = vrot.lane.b32.xlu0 %v1582_v15, %s1515_s10  ;;  %142 = vrot.lane.b32.xlu1 %v1588_v19, %s1514_s9 }
  0xa2   :  { %188 = vrot.lane.b32.xlu0 %v1584_v16, %s1515_s10  ;;  %146 = vrot.lane.b32.xlu1 %v1592_v20, %s1514_s9 }
  0xa6   :  { %228 = vrot.lane.b32.xlu0 %v1582_v15, %s1516_s11  ;;  %186 = vrot.lane.b32.xlu1 %v1588_v19, %s1515_s10 }
  0xaa   :  { %232 = vrot.lane.b32.xlu0 %v1584_v16, %s1516_s11  ;;  %190 = vrot.lane.b32.xlu1 %v1592_v20, %s1515_s10 }
  0xae   :  { %272 = vrot.lane.b32.xlu0 %v1582_v15, %s1517_s12  ;;  %230 = vrot.lane.b32.xlu1 %v1588_v19, %s1516_s11 }
  0xb2   :  { %276 = vrot.lane.b32.xlu0 %v1584_v16, %s1517_s12  ;;  %234 = vrot.lane.b32.xlu1 %v1592_v20, %s1516_s11 }
  0xb6   :  { %316 = vrot.lane.b32.xlu0 %v1582_v15, %s1518_s13  ;;  %274 = vrot.lane.b32.xlu1 %v1588_v19, %s1517_s12 }
  0xba   :  { %320 = vrot.lane.b32.xlu0 %v1584_v16, %s1518_s13  ;;  %278 = vrot.lane.b32.xlu1 %v1592_v20, %s1517_s12 }
  0xbe   :  { %360 = vrot.lane.b32.xlu0 %v1582_v15, %s1519_s14  ;;  %318 = vrot.lane.b32.xlu1 %v1588_v19, %s1518_s13 }
  0xc2   :  { %364 = vrot.lane.b32.xlu0 %v1584_v16, %s1519_s14  ;;  %322 = vrot.lane.b32.xlu1 %v1592_v20, %s1518_s13 }
  0xc6   :  { %404 = vrot.lane.b32.xlu0 %v1582_v15, %s1520_s15  ;;  %362 = vrot.lane.b32.xlu1 %v1588_v19, %s1519_s14 }
  0xca   :  { %408 = vrot.lane.b32.xlu0 %v1584_v16, %s1520_s15  ;;  %366 = vrot.lane.b32.xlu1 %v1592_v20, %s1519_s14 }
  0xce   :  { %448 = vrot.lane.b32.xlu0 %v1582_v15, %s1521_s16  ;;  %406 = vrot.lane.b32.xlu1 %v1588_v19, %s1520_s15 }
  0xd2   :  { %452 = vrot.lane.b32.xlu0 %v1584_v16, %s1521_s16  ;;  %410 = vrot.lane.b32.xlu1 %v1592_v20, %s1520_s15 }
  0xd6   :  { %492 = vrot.lane.b32.xlu0 %v1582_v15, %s1522_s17  ;;  %450 = vrot.lane.b32.xlu1 %v1588_v19, %s1521_s16 }
  0xda   :  { %496 = vrot.lane.b32.xlu0 %v1584_v16, %s1522_s17  ;;  %454 = vrot.lane.b32.xlu1 %v1592_v20, %s1521_s16 }
  0xde   :  { %536 = vrot.lane.b32.xlu0 %v1582_v15, %s1523_s18  ;;  %494 = vrot.lane.b32.xlu1 %v1588_v19, %s1522_s17 }
  0xe2   :  { %540 = vrot.lane.b32.xlu0 %v1584_v16, %s1523_s18  ;;  %498 = vrot.lane.b32.xlu1 %v1592_v20, %s1522_s17 }
  0xe6   :  { %580 = vrot.lane.b32.xlu0 %v1582_v15, %s1524_s19  ;;  %538 = vrot.lane.b32.xlu1 %v1588_v19, %s1523_s18 }
  0xea   :  { %584 = vrot.lane.b32.xlu0 %v1584_v16, %s1524_s19  ;;  %542 = vrot.lane.b32.xlu1 %v1592_v20, %s1523_s18 }
  0xee   :  { %628 = vrot.lane.b32.xlu0 %v1582_v15, %s1525_s20  ;;  %582 = vrot.lane.b32.xlu1 %v1588_v19, %s1524_s19 }
  0xf2   :  { %632 = vrot.lane.b32.xlu0 %v1584_v16, %s1525_s20  ;;  %586 = vrot.lane.b32.xlu1 %v1592_v20, %s1524_s19 }
  0xf6   :  { %672 = vrot.lane.b32.xlu0 %v1582_v15, %s1526_s21  ;;  %630 = vrot.lane.b32.xlu1 %v1588_v19, %s1525_s20 }
  0xfa   :  { %676 = vrot.lane.b32.xlu0 %v1584_v16, %s1526_s21  ;;  %634 = vrot.lane.b32.xlu1 %v1592_v20, %s1525_s20 }
  0xfc   :  { %v56_v22 = vpop.permute.xlu0 %55  ;;  %v52_v23 = vpop.permute.xlu1 %51 }
  0xfe   :  { %716 = vrot.lane.b32.xlu0 %v1582_v15, %s1527_s22  ;;  %674 = vrot.lane.b32.xlu1 %v1588_v19, %s1526_s21 }
 0x100   :  { %v1653_v26 = vpop.permute.xlu0 %96  ;;  %v54_v31 = vpop.permute.xlu1 %53 }
 0x101   :  { %v64_v45 = vsel %vm61_vm0, %v52_v23, %v54_v31  ;;  %v63_v48 = vsel %vm61_vm0, %v54_v31, %v56_v22 }
 0x102   :  { %720 = vrot.lane.b32.xlu0 %v1584_v16, %s1527_s22  ;;  %678 = vrot.lane.b32.xlu1 %v1592_v20, %s1526_s21  ;;  %v1713_v58 = vmul.f32 %v810_v36, %v64_v45  ;;  %v1722_v62 = vmul.f32 %v814_v37, %v63_v48  ;;  %v89_v3 = vmul.f32 %v75_v44, %v64_v45  ;;  %v1764_v37 = vld [vmem:[%s2247_s5 + $0x2] ss:$8 sm:$0xf] }
 0x103   :  { %v90_v27 = vmul.f32 %v79_v35, %v63_v48  ;;  %v171_v48 = vrot.slane %v1764_v37, %v1669_v33 }
 0x104   :  { %v101_v38 = vpop.permute.xlu0 %100  ;;  %v58_v39 = vpop.permute.xlu1 %57 }
 0x105   :  { %v65_v52 = vsel %vm61_vm0, %v58_v39, %v52_v23  ;;  %v62_v59 = vsel %vm61_vm0, %v56_v22, %v58_v39  ;;  %vm724_vm0 = vcmp.lt.s32.totalorder %v1651_v25, 120 }
 0x106   :  { %760 = vrot.lane.b32.xlu0 %v1582_v15, %s1528_s1  ;;  %718 = vrot.lane.b32.xlu1 %v1588_v19, %s1527_s22  ;;  %v88_v1 = vmul.f32 %v71_v41, %v65_v52  ;;  %v1736_v6 = vmul.f32 %v818_v42, %v62_v59  ;;  %v1738_v7 = vmul.f32 %v822_v43, %v65_v52  ;;  %v1376_v41 = vld [vmem:[%s2247_s5 + $0x45] ss:$8 sm:$0xf] }
 0x107   :  { %v91_v23 = vmul.f32 %v83_v51, %v62_v59  ;;  %v163_v42 = vrot.slane %v1764_v37, %v1662_v29  ;;  %v207_v52 = vrot.slane %v1359_v40, %v1662_v29  ;;  %v203_v59 = vrot.slane %v1359_v40, %v1660_v28 }
 0x108   :  { %v1708_v53 = vpop.permute.xlu0 %140  ;;  %v99_v54 = vpop.permute.xlu1 %98 }
 0x109   :  { %v106_v60 = vsel %vm104_vm1, %v99_v54, %v101_v38  ;;  %v107_v61 = vsel %vm104_vm1, %v1653_v26, %v99_v54  ;;  %v903_v54 = vrot.slane %v1376_v41, %v1660_v28 }
 0x10a   :  { %v1724_v63 = vmul.f32 %v841_v46, %v107_v61  ;;  %v1726_v0 = vmul.f32 %v845_v47, %v106_v60  ;;  %764 = vrot.lane.b32.xlu0 %v1584_v16, %s1528_s1  ;;  %722 = vrot.lane.b32.xlu1 %v1592_v20, %s1527_s22  ;;  %v133_v4 = vmul.f32 %v119_v50, %v107_v61 }
 0x10b   :  { %v134_v12 = vmul.f32 %v123_v49, %v106_v60  ;;  %v159_v46 = vrot.slane %v1764_v37, %v1660_v28  ;;  %v215_v60 = vrot.slane %v1359_v40, %v1669_v33 }
 0x10c   :  { %v145_v8 = vpop.permute.xlu0 %144  ;;  %v103_v9 = vpop.permute.xlu1 %102  ;;  %v1384_v17 = vpack.c.bf16 %v133_v4, %v89_v3  ;;  %v911_v4 = vrot.slane %v1376_v41, %v1664_v30 }
 0x10d   :  { %v105_v13 = vsel %vm104_vm1, %v101_v38, %v103_v9  ;;  %v108_v14 = vsel %vm104_vm1, %v103_v9, %v1653_v26  ;;  %v1375_v38 = vld [vmem:[%s2247_s5 + $0x44] ss:$8 sm:$0xf]  ;;  %v1438_v39 = vpack.c.bf16 %v134_v12, %v90_v27  ;;  %vm768_vm1 = vcmp.lt.s32.totalorder %v1651_v25, 119 }
 0x10e   :  { %v132_v18 = vmul.f32 %v115_v55, %v108_v14  ;;  %v1749_v21 = vmul.f32 %v849_v56, %v105_v13  ;;  %v1751_v22 = vmul.f32 %v853_v57, %v108_v14  ;;  %1196 = vperm.xlu0 %1506, %v1193_v2   ;;  %762 = vrot.lane.b32.xlu1 %v1588_v19, %s1528_s1 }
 0x10f   :  { %1385 = vmatprep.subr.bf16.mxu0 %v1384_v17  ;;  %v135_v24 = vmul.f32 %v127_v5, %v105_v13  ;;  %v872_v43 = vrot.slane %v1375_v38, %v1660_v28  ;;  %v876_v44 = vrot.slane %v1375_v38, %v1662_v29  ;;  %v880_v49 = vrot.slane %v1375_v38, %v1664_v30 }
 0x110   :  { %v1755_v31 = vpop.permute.xlu0 %184  ;;  %v143_v32 = vpop.permute.xlu1 %142  ;;  %v1386_v34 = vpack.c.bf16 %v132_v18, %v88_v1  ;;  %v884_v50 = vrot.slane %v1375_v38, %v1669_v33  ;;  %v907_v55 = vrot.slane %v1376_v41, %v1662_v29  ;;  %v211_v57 = vrot.slane %v1359_v40, %v1664_v30 }
 0x111   :  { %v1436_v35 = vpack.c.bf16 %v135_v24, %v91_v23  ;;  %v151_v51 = vsel %vm148_vm2, %v1708_v53, %v143_v32  ;;  %v150_v56 = vsel %vm148_vm2, %v143_v32, %v145_v8  ;;  %v915_v5 = vrot.slane %v1376_v41, %v1669_v33  ;;  %v1084_v32 = vld [vmem:[%s2249_s3 + $0x8] sm:$0xff] }
 0x112   :  { %766 = vrot.lane.b32.xlu1 %v1592_v20, %s1528_s1  ;;  %1387 = vmatpush1.bf16.msra.mxu0 %v1386_v34  ;;  %v177_v9 = vmul.f32 %v163_v42, %v151_v51  ;;  %v1809_v12 = vmul.f32 %v872_v43, %v151_v51  ;;  %v1816_v14 = vmul.f32 %v876_v44, %v150_v56 }
 0x113   :  { %1437 = vmatprep.subr.bf16.mxu1 %v1436_v35  ;;  %v167_v23 = vrot.slane %v1764_v37, %v1664_v30  ;;  %1382 = vmatprep.mubr.msk.f32.mxu0 %vm1199_vm4, %v1084_v32 }
 0x114   :  { %1439 = vmatpush1.bf16.msra.mxu1 %v1438_v39  ;;  %v189_v45 = vpop.permute.xlu0 %188  ;;  %v147_v47 = vpop.permute.xlu1 %146  ;;  %1383 = vmatprep.mubr.msk.f32.mxu1 %vm1199_vm4, %v1084_v32 }
 0x115   :  { %v149_v61 = vsel %vm148_vm2, %v145_v8, %v147_v47  ;;  %v152_v1 = vsel %vm148_vm2, %v147_v47, %v1708_v53  ;;  %v178_v51 = vmul.f32 %v167_v23, %v150_v56 }
 0x116   :  { %v176_v24 = vmul.f32 %v159_v46, %v152_v1  ;;  %v179_v27 = vmul.f32 %v171_v48, %v149_v61  ;;  %v1827_v34 = vmul.f32 %v880_v49, %v149_v61  ;;  %v1833_v37 = vmul.f32 %v884_v50, %v152_v1  ;;  %v1378_v61 = vld [vmem:[%s2247_s5 + $0x47] ss:$8 sm:$0xf] }
 0x117   :  { %v965_v32 = vrot.slane %v1378_v61, %v1660_v28 }
 0x118   :  { %v1805_v2 = vpop.permute.xlu0 %228  ;;  %v187_v3 = vpop.permute.xlu1 %186  ;;  %2262 = vst [vmem:[#allocation3_spill] sm:$0xff] %v1827_v34 }
 0x119   :  { %v194_v13 = vsel %vm192_vm3, %v187_v3, %v189_v45  ;;  %v195_v8 = vsel %vm192_vm3, %v1755_v31, %v187_v3 }
 0x11a   :  { %v221_v53 = vmul.f32 %v207_v52, %v195_v8  ;;  %v1818_v17 = vmul.f32 %v903_v54, %v195_v8  ;;  %v1820_v18 = vmul.f32 %v907_v55, %v194_v13  ;;  %v222_v42 = vmul.f32 %v211_v57, %v194_v13 }
 0x11c   :  { %v233_v38 = vpop.permute.xlu0 %232  ;;  %v191_v35 = vpop.permute.xlu1 %190  ;;  %v1388_v39 = vpack.c.bf16 %v221_v53, %v177_v9  ;;  %v1442_v56 = vpack.c.bf16 %v222_v42, %v178_v51  ;;  %v2275_v25 = vpack.c.bf16 %v1820_v18, %v1816_v14 }
 0x11d   :  { %v193_v43 = vsel %vm192_vm3, %v189_v45, %v191_v35  ;;  %v196_v44 = vsel %vm192_vm3, %v191_v35, %v1755_v31  ;;  %v1360_v31 = vld [vmem:[%s2247_s5 + $0x4] ss:$8 sm:$0xf]  ;;  %v969_v35 = vrot.slane %v1378_v61, %v1662_v29 }
 0x11e   :  { %v220_v46 = vmul.f32 %v203_v59, %v196_v44  ;;  %v223_v47 = vmul.f32 %v215_v60, %v193_v43  ;;  %v1840_v48 = vmul.f32 %v911_v4, %v193_v43  ;;  %v1842_v49 = vmul.f32 %v915_v5, %v196_v44  ;;  %1389 = vmatprep.subr.bf16.mxu0 %v1388_v39  ;;  %v1377_v59 = vld [vmem:[%s2247_s5 + $0x46] ss:$8 sm:$0xf]  ;;  %v1361_v60 = vld [vmem:[%s2247_s5 + $0x5] ss:$8 sm:$0xf] }
 0x11f   :  { %v251_v1 = vrot.slane %v1360_v31, %v1662_v29  ;;  %v934_v3 = vrot.slane %v1377_v59, %v1660_v28  ;;  %v938_v4 = vrot.slane %v1377_v59, %v1662_v29  ;;  %v247_v9 = vrot.slane %v1360_v31, %v1660_v28 }
 0x120   :  { %2263 = vst [vmem:[#allocation4_spill] sm:$0xff] %v1840_v48  ;;  %v273_v52 = vpop.permute.xlu0 %272  ;;  %v231_v50 = vpop.permute.xlu1 %230  ;;  %v1390_v54 = vpack.c.bf16 %v220_v46, %v176_v24  ;;  %v1440_v55 = vpack.c.bf16 %v223_v47, %v179_v27  ;;  %v259_v8 = vrot.slane %v1360_v31, %v1669_v33  ;;  %v942_v53 = vrot.slane %v1377_v59, %v1664_v30 }
 0x121   :  { %v946_v23 = vrot.slane %v1377_v59, %v1669_v33  ;;  %v239_v24 = vsel %vm236_vm5, %v1805_v2, %v231_v50  ;;  %v295_v27 = vrot.slane %v1361_v60, %v1662_v29  ;;  %v238_v39 = vsel %vm236_vm5, %v231_v50, %v233_v38 }
 0x122   :  { %1391 = vmatpush1.bf16.msra.mxu0 %v1390_v54  ;;  %1441 = vmatprep.subr.bf16.mxu1 %v1440_v55  ;;  %v299_v42 = vrot.slane %v1361_v60, %v1664_v30  ;;  %v291_v43 = vrot.slane %v1361_v60, %v1660_v28  ;;  %v303_v44 = vrot.slane %v1361_v60, %v1669_v33 }
 0x123   :  { %1443 = vmatpush1.bf16.msra.mxu1 %v1442_v56  ;;  %v973_v55 = vrot.slane %v1378_v61, %v1664_v30  ;;  %v977_v50 = vrot.slane %v1378_v61, %v1669_v33  ;;  %v265_v59 = vmul.f32 %v251_v1, %v239_v24  ;;  %v1889_v56 = vmul.f32 %v934_v3, %v239_v24 }
 0x124   :  { %v277_v5 = vpop.permute.xlu0 %276  ;;  %v235_v13 = vpop.permute.xlu1 %234  ;;  %v1895_v57 = vmul.f32 %v938_v4, %v238_v39  ;;  %v255_v36 = vrot.slane %v1360_v31, %v1664_v30 }
 0x125   :  { %v237_v46 = vsel %vm236_vm5, %v233_v38, %v235_v13  ;;  %v240_v47 = vsel %vm236_vm5, %v235_v13, %v1805_v2 }
 0x126   :  { %v264_v41 = vmul.f32 %v247_v9, %v240_v47  ;;  %v267_v61 = vmul.f32 %v259_v8, %v237_v46  ;;  %v1902_v1 = vmul.f32 %v942_v53, %v237_v46  ;;  %v266_v46 = vmul.f32 %v255_v36, %v238_v39  ;;  %v1363_v36 = vld [vmem:[%s2247_s5 + $0x7] ss:$8 sm:$0xf] }
 0x128   :  { %v1885_v51 = vpop.permute.xlu0 %316  ;;  %v275_v54 = vpop.permute.xlu1 %274  ;;  %2264 = vst [vmem:[#allocation5_spill] sm:$0xff] %v1902_v1 }
 0x129   :  { %v282_v60 = vsel %vm280_vm6, %v275_v54, %v277_v5  ;;  %v283_v38 = vsel %vm280_vm6, %v273_v52, %v275_v54 }
 0x12a   :  { %v309_v45 = vmul.f32 %v295_v27, %v283_v38  ;;  %v1897_v2 = vmul.f32 %v965_v32, %v283_v38  ;;  %v1899_v13 = vmul.f32 %v969_v35, %v282_v60  ;;  %v1908_v27 = vmul.f32 %v946_v23, %v240_v47 }
 0x12b   :  { %v310_v32 = vmul.f32 %v299_v42, %v282_v60 }
 0x12c   :  { %v321_v3 = vpop.permute.xlu0 %320  ;;  %v279_v24 = vpop.permute.xlu1 %278  ;;  %v1392_v26 = vpack.c.bf16 %v309_v45, %v265_v59  ;;  %2265 = vst [vmem:[#allocation6_spill] sm:$0xff] %v1908_v27  ;;  %v2281_v14 = vpack.c.bf16 %v1897_v2, %v1889_v56 }
 0x12d   :  { %v281_v35 = vsel %vm280_vm6, %v277_v5, %v279_v24  ;;  %v284_v31 = vsel %vm280_vm6, %v279_v24, %v273_v52  ;;  %v1362_v52 = vld [vmem:[%s2247_s5 + $0x6] ss:$8 sm:$0xf] }
 0x12e   :  { %v308_v9 = vmul.f32 %v291_v43, %v284_v31  ;;  %v311_v8 = vmul.f32 %v303_v44, %v281_v35  ;;  %v1914_v53 = vmul.f32 %v973_v55, %v281_v35  ;;  %v1916_v45 = vmul.f32 %v977_v50, %v284_v31  ;;  %1393 = vmatprep.subr.bf16.mxu0 %v1392_v26  ;;  %v1379_v43 = vld [vmem:[%s2247_s5 + $0x60] ss:$8 sm:$0xf] }
 0x12f   :  { %v1446_v26 = vpack.c.bf16 %v310_v32, %v266_v46  ;;  %v339_v39 = vrot.slane %v1362_v52, %v1662_v29  ;;  %v996_v44 = vrot.slane %v1379_v43, %v1660_v28  ;;  %v1000_v47 = vrot.slane %v1379_v43, %v1662_v29 }
 0x130   :  { %2266 = vst [vmem:[#allocation7_spill] sm:$0xff] %v1914_v53  ;;  %2267 = vst [vmem:[#allocation8_spill] sm:$0xff] %v1916_v45  ;;  %v361_v54 = vpop.permute.xlu0 %360  ;;  %v319_v59 = vpop.permute.xlu1 %318  ;;  %v1394_v38 = vpack.c.bf16 %v308_v9, %v264_v41  ;;  %v1444_v23 = vpack.c.bf16 %v311_v8, %v267_v61  ;;  %v1380_v41 = vld [vmem:[%s2247_s5 + $0x61] ss:$8 sm:$0xf]  ;;  %v335_v50 = vrot.slane %v1362_v52, %v1660_v28 }
 0x131   :  { %v347_v61 = vrot.slane %v1362_v52, %v1669_v33  ;;  %v1004_v24 = vrot.slane %v1379_v43, %v1664_v30  ;;  %v1008_v32 = vrot.slane %v1379_v43, %v1669_v33  ;;  %v327_v35 = vsel %vm324_vm7, %v1885_v51, %v319_v59 }
 0x132   :  { %1395 = vmatpush1.bf16.msra.mxu0 %v1394_v38  ;;  %1445 = vmatprep.subr.bf16.mxu1 %v1444_v23  ;;  %v383_v31 = vrot.slane %v1363_v36, %v1662_v29  ;;  %v1027_v9 = vrot.slane %v1380_v41, %v1660_v28  ;;  %v1031_v8 = vrot.slane %v1380_v41, %v1662_v29 }
 0x133   :  { %1447 = vmatpush1.bf16.msra.mxu1 %v1446_v26  ;;  %v326_v46 = vsel %vm324_vm7, %v319_v59, %v321_v3  ;;  %v387_v38 = vrot.slane %v1363_v36, %v1664_v30  ;;  %v379_v23 = vrot.slane %v1363_v36, %v1660_v28  ;;  %v391_v43 = vrot.slane %v1363_v36, %v1669_v33 }
 0x134   :  { %v365_v55 = vpop.permute.xlu0 %364  ;;  %v323_v60 = vpop.permute.xlu1 %322  ;;  %v1035_v40 = vrot.slane %v1380_v41, %v1664_v30  ;;  %v1039_v59 = vrot.slane %v1380_v41, %v1669_v33  ;;  %v353_v11 = vmul.f32 %v339_v39, %v327_v35  ;;  %v1963_v10 = vmul.f32 %v996_v44, %v327_v35 }
 0x135   :  { %v325_v26 = vsel %vm324_vm7, %v321_v3, %v323_v60  ;;  %v328_v5 = vsel %vm324_vm7, %v323_v60, %v1885_v51  ;;  %v1969_v1 = vmul.f32 %v1000_v47, %v326_v46  ;;  %v343_v27 = vrot.slane %v1362_v52, %v1664_v30 }
 0x136   :  { %v352_v45 = vmul.f32 %v335_v50, %v328_v5  ;;  %v355_v41 = vmul.f32 %v347_v61, %v325_v26  ;;  %v1976_v39 = vmul.f32 %v1004_v24, %v325_v26  ;;  %v1982_v47 = vmul.f32 %v1008_v32, %v328_v5 }
 0x137   :  { %v2290_v2 = vld [vmem:[#allocation7_spill] sm:$0xff] }
 0x138   :  { %v1959_v42 = vpop.permute.xlu0 %404  ;;  %v363_v4 = vpop.permute.xlu1 %362  ;;  %2268 = vst [vmem:[#allocation9_spill] sm:$0xff] %v1976_v39 }
 0x139   :  { %v370_v36 = vsel %vm368_vm8, %v363_v4, %v365_v55  ;;  %v371_v3 = vsel %vm368_vm8, %v361_v54, %v363_v4 }
 0x13a   :  { %v397_v53 = vmul.f32 %v383_v31, %v371_v3  ;;  %v1971_v51 = vmul.f32 %v1027_v9, %v371_v3  ;;  %v1973_v60 = vmul.f32 %v1031_v8, %v370_v36  ;;  %v398_v31 = vmul.f32 %v387_v38, %v370_v36 }
 0x13c   :  { %v409_v44 = vpop.permute.xlu0 %408  ;;  %v367_v35 = vpop.permute.xlu1 %366  ;;  %v1396_v34 = vpack.c.bf16 %v397_v53, %v353_v11  ;;  %v354_v53 = vmul.f32 %v343_v27, %v326_v46  ;;  %v2289_v56 = vpack.c.bf16 %v1971_v51, %v1963_v10 }
 0x13d   :  { %v369_v9 = vsel %vm368_vm8, %v365_v55, %v367_v35  ;;  %v372_v52 = vsel %vm368_vm8, %v367_v35, %v361_v54 }
 0x13e   :  { %v396_v50 = vmul.f32 %v379_v23, %v372_v52  ;;  %v399_v61 = vmul.f32 %v391_v43, %v369_v9  ;;  %v1988_v24 = vmul.f32 %v1035_v40, %v369_v9  ;;  %v1990_v11 = vmul.f32 %v1039_v59, %v372_v52  ;;  %1397 = vmatprep.subr.bf16.mxu0 %v1396_v34  ;;  %v1364_v40 = vld [vmem:[%s2247_s5 + $0x20] ss:$8 sm:$0xf]  ;;  %v1365_v34 = vld [vmem:[%s2247_s5 + $0x21] ss:$8 sm:$0xf] }
 0x13f   :  { %v1450_v54 = vpack.c.bf16 %v398_v31, %v354_v53  ;;  %v427_v46 = vrot.slane %v1364_v40, %v1662_v29  ;;  %v471_v38 = vrot.slane %v1365_v34, %v1662_v29  ;;  %v423_v43 = vrot.slane %v1364_v40, %v1660_v28 }
 0x140   :  { %2269 = vst [vmem:[#allocation10_spill] sm:$0xff] %v1988_v24  ;;  %v449_v8 = vpop.permute.xlu0 %448  ;;  %v407_v26 = vpop.permute.xlu1 %406  ;;  %v1398_v3 = vpack.c.bf16 %v396_v50, %v352_v45  ;;  %v1448_v5 = vpack.c.bf16 %v399_v61, %v355_v41  ;;  %v435_v41 = vrot.slane %v1364_v40, %v1669_v33  ;;  %v475_v35 = vrot.slane %v1365_v34, %v1664_v30 }
 0x141   :  { %v2009_v23 = vsel %vm412_vm9, %v1959_v42, %v407_v26  ;;  %v467_v9 = vrot.slane %v1365_v34, %v1660_v28  ;;  %v479_v53 = vrot.slane %v1365_v34, %v1669_v33 }
 0x142   :  { %1399 = vmatpush1.bf16.msra.mxu0 %v1398_v3  ;;  %1449 = vmatprep.subr.bf16.mxu1 %v1448_v5  ;;  %2270 = vst [vmem:[#allocation11_spill] sm:$0xff] %v2009_v23  ;;  %v441_v52 = vmul.f32 %v427_v46, %v2009_v23  ;;  %v431_v3 = vrot.slane %v1364_v40, %v1664_v30 }
 0x143   :  { %1451 = vmatpush1.bf16.msra.mxu1 %v1450_v54  ;;  %v2033_v46 = vsel %vm412_vm9, %v407_v26, %v409_v44 }
 0x144   :  { %v453_v27 = vpop.permute.xlu0 %452  ;;  %v411_v45 = vpop.permute.xlu1 %410 }
 0x145   :  { %v2024_v5 = vsel %vm412_vm9, %v409_v44, %v411_v45  ;;  %v2029_v54 = vsel %vm412_vm9, %v411_v45, %v1959_v42  ;;  %v442_v44 = vmul.f32 %v431_v3, %v2033_v46 }
 0x146   :  { %2271 = vst [vmem:[#allocation12_spill] sm:$0xff] %v2024_v5  ;;  %2272 = vst [vmem:[#allocation13_spill] sm:$0xff] %v2029_v54  ;;  %v440_v32 = vmul.f32 %v423_v43, %v2029_v54  ;;  %v443_v4 = vmul.f32 %v435_v41, %v2024_v5 }
 0x147   :  { %v2296_v51 = vld [vmem:[#allocation10_spill] sm:$0xff] }
 0x148   :  { %v493_v59 = vpop.permute.xlu0 %492  ;;  %v451_v36 = vpop.permute.xlu1 %450 }
 0x149   :  { %v459_v31 = vsel %vm456_vm10, %v449_v8, %v451_v36  ;;  %v458_v50 = vsel %vm456_vm10, %v451_v36, %v453_v27 }
 0x14a   :  { %v485_v61 = vmul.f32 %v471_v38, %v459_v31  ;;  %v486_v31 = vmul.f32 %v475_v35, %v458_v50 }
 0x14c   :  { %v497_v55 = vpop.permute.xlu0 %496  ;;  %v455_v36 = vpop.permute.xlu1 %454  ;;  %v1400_v38 = vpack.c.bf16 %v485_v61, %v441_v52  ;;  %v1454_v35 = vpack.c.bf16 %v486_v31, %v442_v44 }
 0x14d   :  { %v457_v40 = vsel %vm456_vm10, %v453_v27, %v455_v36  ;;  %v460_v34 = vsel %vm456_vm10, %v455_v36, %v449_v8  ;;  %v1366_v8 = vld [vmem:[%s2247_s5 + $0x22] ss:$8 sm:$0xf]  ;;  %v1367_v27 = vld [vmem:[%s2247_s5 + $0x23] ss:$8 sm:$0xf] }
 0x14e   :  { %v484_v42 = vmul.f32 %v467_v9, %v460_v34  ;;  %v487_v45 = vmul.f32 %v479_v53, %v457_v40  ;;  %1401 = vmatprep.subr.bf16.mxu0 %v1400_v38  ;;  %v515_v9 = vrot.slane %v1366_v8, %v1662_v29  ;;  %v523_v53 = vrot.slane %v1366_v8, %v1669_v33 }
 0x14f   :  { %v563_v3 = vrot.slane %v1367_v27, %v1664_v30  ;;  %v555_v38 = vrot.slane %v1367_v27, %v1660_v28  ;;  %v519_v44 = vrot.slane %v1366_v8, %v1664_v30 }
 0x150   :  { %v537_v26 = vpop.permute.xlu0 %536  ;;  %v495_v48 = vpop.permute.xlu1 %494  ;;  %v1402_v39 = vpack.c.bf16 %v484_v42, %v440_v32  ;;  %v1452_v52 = vpack.c.bf16 %v487_v45, %v443_v4  ;;  %v511_v32 = vrot.slane %v1366_v8, %v1660_v28  ;;  %v567_v42 = vrot.slane %v1367_v27, %v1669_v33  ;;  %v1368_v45 = vld [vmem:[%s2247_s5 + $0x24] ss:$8 sm:$0xf] }
 0x151   :  { %v503_v4 = vsel %vm500_vm11, %v493_v59, %v495_v48  ;;  %v603_v5 = vrot.slane %v1368_v45, %v1662_v29 }
 0x152   :  { %1403 = vmatpush1.bf16.msra.mxu0 %v1402_v39  ;;  %1453 = vmatprep.subr.bf16.mxu1 %v1452_v52  ;;  %v559_v39 = vrot.slane %v1367_v27, %v1662_v29  ;;  %v529_v31 = vmul.f32 %v515_v9, %v503_v4  ;;  %v502_v9 = vsel %vm500_vm11, %v495_v48, %v497_v55 }
 0x153   :  { %1455 = vmatpush1.bf16.msra.mxu1 %v1454_v35  ;;  %v530_v48 = vmul.f32 %v519_v44, %v502_v9 }
 0x154   :  { %v541_v43 = vpop.permute.xlu0 %540  ;;  %v499_v41 = vpop.permute.xlu1 %498 }
 0x155   :  { %v501_v52 = vsel %vm500_vm11, %v497_v55, %v499_v41  ;;  %v504_v35 = vsel %vm500_vm11, %v499_v41, %v493_v59 }
 0x156   :  { %v528_v24 = vmul.f32 %v511_v32, %v504_v35  ;;  %v531_v54 = vmul.f32 %v523_v53, %v501_v52 }
 0x158   :  { %v581_v50 = vpop.permute.xlu0 %580  ;;  %v539_v61 = vpop.permute.xlu1 %538 }
 0x159   :  { %v547_v36 = vsel %vm544_vm12, %v537_v26, %v539_v61  ;;  %v546_v40 = vsel %vm544_vm12, %v539_v61, %v541_v43 }
 0x15a   :  { %v573_v34 = vmul.f32 %v559_v39, %v547_v36  ;;  %v574_v27 = vmul.f32 %v563_v3, %v546_v40  ;;  %v607_v3 = vrot.slane %v1368_v45, %v1664_v30 }
 0x15c   :  { %v585_v4 = vpop.permute.xlu0 %584  ;;  %v543_v61 = vpop.permute.xlu1 %542  ;;  %v1404_v39 = vpack.c.bf16 %v573_v34, %v529_v31  ;;  %v1458_v40 = vpack.c.bf16 %v574_v27, %v530_v48 }
 0x15d   :  { %v545_v36 = vsel %vm544_vm12, %v541_v43, %v543_v61  ;;  %v548_v8 = vsel %vm544_vm12, %v543_v61, %v537_v26  ;;  %v599_v26 = vrot.slane %v1368_v45, %v1660_v28 }
 0x15e   :  { %v572_v59 = vmul.f32 %v555_v38, %v548_v8  ;;  %v575_v41 = vmul.f32 %v567_v42, %v545_v36  ;;  %1405 = vmatprep.subr.bf16.mxu0 %v1404_v39  ;;  %v611_v38 = vrot.slane %v1368_v45, %v1669_v33 }
 0x160   :  { %v629_v55 = vpop.permute.xlu0 %628  ;;  %v583_v23 = vpop.permute.xlu1 %582  ;;  %v1406_v31 = vpack.c.bf16 %v572_v59, %v528_v24  ;;  %v1456_v34 = vpack.c.bf16 %v575_v41, %v531_v54 }
 0x161   :  { %v591_v43 = vsel %vm588_vm13, %v581_v50, %v583_v23  ;;  %v590_v32 = vsel %vm588_vm13, %v583_v23, %v585_v4 }
 0x162   :  { %v617_v53 = vmul.f32 %v603_v5, %v591_v43  ;;  %1407 = vmatpush1.bf16.msra.mxu0 %v1406_v31  ;;  %1457 = vmatprep.subr.bf16.mxu1 %v1456_v34  ;;  %v618_v44 = vmul.f32 %v607_v3, %v590_v32 }
 0x163   :  { %1459 = vmatpush1.bf16.msra.mxu1 %v1458_v40 }
 0x164   :  { %v633_v42 = vpop.permute.xlu0 %632  ;;  %v587_v24 = vpop.permute.xlu1 %586  ;;  %v1408_v54 = vpack.c.bf16 %v1588_v19, %v617_v53  ;;  %v1462_v27 = vpack.c.bf16 %v1584_v16, %v618_v44  ;;  %v1369_v19 = vld [vmem:[%s2247_s5 + $0x26] ss:$8 sm:$0xf] }
 0x165   :  { %v589_v52 = vsel %vm588_vm13, %v585_v4, %v587_v24  ;;  %v592_v35 = vsel %vm588_vm13, %v587_v24, %v581_v50  ;;  %v1370_v50 = vld [vmem:[%s2247_s5 + $0x27] ss:$8 sm:$0xf]  ;;  %v655_v48 = vrot.slane %v1369_v19, %v1664_v30  ;;  %v659_v31 = vrot.slane %v1369_v19, %v1669_v33 }
 0x166   :  { %v616_v9 = vmul.f32 %v599_v26, %v592_v35  ;;  %v619_v61 = vmul.f32 %v611_v38, %v589_v52  ;;  %1409 = vmatprep.subr.bf16.mxu0 %v1408_v54  ;;  %v691_v16 = vrot.slane %v1370_v50, %v1660_v28  ;;  %v695_v8 = vrot.slane %v1370_v50, %v1662_v29 }
 0x167   :  { %v699_v26 = vrot.slane %v1370_v50, %v1664_v30  ;;  %v703_v32 = vrot.slane %v1370_v50, %v1669_v33 }
 0x168   :  { %v673_v23 = vpop.permute.xlu0 %672  ;;  %v631_v5 = vpop.permute.xlu1 %630  ;;  %v1410_v39 = vpack.c.bf16 %v1582_v15, %v616_v9  ;;  %v1460_v45 = vpack.c.bf16 %v1592_v20, %v619_v61  ;;  %v647_v15 = vrot.slane %v1369_v19, %v1660_v28  ;;  %v651_v20 = vrot.slane %v1369_v19, %v1662_v29 }
 0x169   :  { %v638_v59 = vsel %vm636_vm14, %v631_v5, %v633_v42  ;;  %v639_v41 = vsel %vm636_vm14, %v629_v55, %v631_v5 }
 0x16a   :  { %1411 = vmatpush1.bf16.msra.mxu0 %v1410_v39  ;;  %1461 = vmatprep.subr.bf16.mxu1 %v1460_v45  ;;  %v664_v53 = vmul.f32 %v647_v15, %v639_v41  ;;  %v665_v38 = vmul.f32 %v651_v20, %v638_v59 }
 0x16b   :  { %1463 = vmatpush1.bf16.msra.mxu1 %v1462_v27 }
 0x16c   :  { %v677_v4 = vpop.permute.xlu0 %676  ;;  %v635_v36 = vpop.permute.xlu1 %634 }
 0x16d   :  { %v637_v44 = vsel %vm636_vm14, %v633_v42, %v635_v36  ;;  %v640_v52 = vsel %vm636_vm14, %v635_v36, %v629_v55  ;;  %v1371_v36 = vld [vmem:[%s2247_s5 + $0x40] ss:$8 sm:$0xf] }
 0x16e   :  { %v666_v27 = vmul.f32 %v655_v48, %v637_v44  ;;  %v667_v19 = vmul.f32 %v659_v31, %v640_v52  ;;  %v739_v59 = vrot.slane %v1371_v36, %v1662_v29 }
 0x170   :  { %v717_v34 = vpop.permute.xlu0 %716  ;;  %v675_v3 = vpop.permute.xlu1 %674 }
 0x171   :  { %v682_v43 = vsel %vm680_vm15, %v675_v3, %v677_v4  ;;  %v683_v40 = vsel %vm680_vm15, %v673_v23, %v675_v3 }
 0x172   :  { %v708_v24 = vmul.f32 %v691_v16, %v683_v40  ;;  %v709_v54 = vmul.f32 %v695_v8, %v682_v43  ;;  %v735_v8 = vrot.slane %v1371_v36, %v1660_v28  ;;  %v743_v40 = vrot.slane %v1371_v36, %v1664_v30 }
 0x174   :  { %v721_v35 = vpop.permute.xlu0 %720  ;;  %v679_v9 = vpop.permute.xlu1 %678  ;;  %v1412_v61 = vpack.c.bf16 %v709_v54, %v665_v38  ;;  %v1414_v5 = vpack.c.bf16 %v708_v24, %v664_v53 }
 0x175   :  { %v681_v39 = vsel %vm680_vm15, %v677_v4, %v679_v9  ;;  %v684_v45 = vsel %vm680_vm15, %v679_v9, %v673_v23  ;;  %v1372_v23 = vld [vmem:[%s2247_s5 + $0x41] ss:$8 sm:$0xf] }
 0x176   :  { %v710_v50 = vmul.f32 %v699_v26, %v681_v39  ;;  %v711_v15 = vmul.f32 %v703_v32, %v684_v45  ;;  %1413 = vmatprep.subr.bf16.mxu0 %v1412_v61  ;;  %v779_v41 = vrot.slane %v1372_v23, %v1660_v28  ;;  %v783_v48 = vrot.slane %v1372_v23, %v1662_v29 }
 0x177   :  { %1415 = vmatpush1.bf16.msra.mxu0 %v1414_v5  ;;  %v747_v26 = vrot.slane %v1371_v36, %v1669_v33  ;;  %v787_v24 = vrot.slane %v1372_v23, %v1664_v30  ;;  %v791_v54 = vrot.slane %v1372_v23, %v1669_v33 }
 0x178   :  { %v719_v42 = vpop.permute.xlu1 %718  ;;  %v1464_v20 = vpack.c.bf16 %v711_v15, %v667_v19  ;;  %v1466_v16 = vpack.c.bf16 %v710_v50, %v666_v27  ;;  %v761_v55 = vpop.permute.xlu0 %760 }
 0x179   :  { %v726_v31 = vsel %vm724_vm0, %v719_v42, %v721_v35  ;;  %v727_v3 = vsel %vm724_vm0, %v717_v34, %v719_v42 }
 0x17a   :  { %1465 = vmatprep.subr.bf16.mxu1 %v1464_v20  ;;  %v752_v44 = vmul.f32 %v735_v8, %v727_v3  ;;  %v753_v52 = vmul.f32 %v739_v59, %v726_v31  ;;  %v2291_v8 = vld [vmem:[#allocation5_spill] sm:$0xff]  ;;  %v2299_v3 = vld [vmem:[#allocation12_spill] sm:$0xff] }
 0x17b   :  { %1467 = vmatpush1.bf16.msra.mxu1 %v1466_v16  ;;  %v2292_v59 = vpack.c.bf16 %v2290_v2, %v2291_v8 }
 0x17c   :  { %v723_v4 = vpop.permute.xlu1 %722  ;;  %v765_v43 = vpop.permute.xlu0 %764 }
 0x17d   :  { %v725_v5 = vsel %vm724_vm0, %v721_v35, %v723_v4  ;;  %v728_v39 = vsel %vm724_vm0, %v723_v4, %v717_v34  ;;  %v2273_v35 = vpack.c.bf16 %v1726_v0, %v1722_v62  ;;  %v2274_v4 = vpack.c.bf16 %v1724_v63, %v1713_v58  ;;  %v1381_v62 = vld [vmem:[%s2247_s5 + $0x62] ss:$8 sm:$0xf] }
 0x17e   :  { %v754_v42 = vmul.f32 %v743_v40, %v725_v5  ;;  %v755_v20 = vmul.f32 %v747_v26, %v728_v39  ;;  %v2277_v0 = vpack.c.bf16 %v1818_v17, %v1809_v12  ;;  %v2278_v58 = vpack.c.bf16 %v1749_v21, %v1736_v6  ;;  %v2282_v12 = vld [vmem:[#allocation4_spill] sm:$0xff]  ;;  %v2283_v17 = vld [vmem:[#allocation3_spill] sm:$0xff]  ;;  %v1510_v39 = vld [vmem:[%s2246_s0 + $0x18] sm:$0xff] }
 0x17f   :  { %v2279_v63 = vpack.c.bf16 %v1899_v13, %v1895_v57  ;;  %v2284_v18 = vpack.c.bf16 %v2282_v12, %v2283_v17  ;;  %v2285_v6 = vpack.c.bf16 %v1973_v60, %v1969_v1  ;;  %v2286_v21 = vld [vmem:[#allocation8_spill] sm:$0xff]  ;;  %v2287_v57 = vld [vmem:[#allocation6_spill] sm:$0xff]  ;;  %v2293_v1 = vpack.c.bf16 %v1990_v11, %v1982_v47  ;;  %v2294_v60 = vld [vmem:[#allocation11_spill] sm:$0xff] }
 0x180   :  { %v763_v32 = vpop.permute.xlu1 %762  ;;  %v2288_v13 = vpack.c.bf16 %v2286_v21, %v2287_v57 }
 0x181   :  { %v770_v53 = vsel %vm768_vm1, %v763_v32, %v765_v43  ;;  %v771_v38 = vsel %vm768_vm1, %v761_v55, %v763_v32  ;;  %v1507_v32 = vld [vmem:[%s2246_s0] sm:$0xff] }
 0x182   :  { %v796_v9 = vmul.f32 %v779_v41, %v771_v38  ;;  %v797_v61 = vmul.f32 %v783_v48, %v770_v53  ;;  %v2297_v48 = vld [vmem:[#allocation9_spill] sm:$0xff]  ;;  %v1508_v38 = vld [vmem:[%s2246_s0 + $0x8] sm:$0xff] }
 0x183   :  { %v2298_v31 = vpack.c.bf16 %v2296_v51, %v2297_v48 }
 0x184   :  { %v767_v45 = vpop.permute.xlu1 %766  ;;  %v1416_v27 = vpack.c.bf16 %v797_v61, %v753_v52  ;;  %v1418_v19 = vpack.c.bf16 %v796_v9, %v752_v44  ;;  %v1509_v61 = vld [vmem:[%s2246_s0 + $0x10] sm:$0xff] }
 0x185   :  { %v769_v50 = vsel %vm768_vm1, %v765_v43, %v767_v45  ;;  %v772_v15 = vsel %vm768_vm1, %v767_v45, %v761_v55  ;;  %v2276_v55 = vpack.c.bf16 %v1751_v22, %v1738_v7  ;;  %v2280_v7 = vpack.c.bf16 %v1842_v49, %v1833_v37 }
 0x186   :  { %v798_v16 = vmul.f32 %v787_v24, %v769_v50  ;;  %v799_v36 = vmul.f32 %v791_v54, %v772_v15  ;;  %1417 = vmatprep.subr.bf16.mxu0 %v1416_v27  ;;  %v1062_v22 = vrot.slane %v1381_v62, %v1662_v29  ;;  %v1058_v37 = vrot.slane %v1381_v62, %v1660_v28 }
 0x187   :  { %1419 = vmatpush1.bf16.msra.mxu0 %v1418_v19  ;;  %v1070_v49 = vrot.slane %v1381_v62, %v1669_v33  ;;  %v1066_v28 = vrot.slane %v1381_v62, %v1664_v30  ;;  %v1083_v33 = vld [vmem:[%s2249_s3] sm:$0xff] }
 0x188   :  { %1421 = vmatprep.subr.bf16.mxu0 %v2273_v35  ;;  %v1468_v34 = vpack.c.bf16 %v799_v36, %v755_v20  ;;  %v1470_v23 = vpack.c.bf16 %v798_v16, %v754_v42  ;;  %v1076_v29 = vmul.f32 %v1062_v22, %v2033_v46  ;;  %v1075_v41 = vmul.f32 %v1058_v37, %v2294_v60  ;;  %v2295_v46 = vld [vmem:[#allocation13_spill] sm:$0xff] }
 0x189   :  { %v1078_v10 = vmul.f32 %v1070_v49, %v2295_v46  ;;  %v1077_v47 = vmul.f32 %v1066_v28, %v2299_v3 }
 0x18a   :  { %1469 = vmatprep.subr.bf16.mxu1 %v1468_v34 }
 0x18b   :  { %1423 = vmatpush1.bf16.msra.mxu0 %v2274_v4  ;;  %1471 = vmatpush1.bf16.msra.mxu1 %v1470_v23 }
 0x18c   :  { %1425 = vmatprep.subr.bf16.mxu0 %v2275_v25  ;;  %1473 = vmatprep.subr.bf16.mxu1 %v2276_v55 }
 0x18d   :  { %v1197_v11 = vpop.permute.xlu0 %1196 }
 0x18f   :  { %1427 = vmatpush1.bf16.msra.mxu0 %v2277_v0  ;;  %1475 = vmatpush1.bf16.msra.mxu1 %v2278_v58 }
 0x190   :  { %1429 = vmatprep.subr.bf16.mxu0 %v2279_v63  ;;  %1477 = vmatprep.subr.bf16.mxu1 %v2280_v7 }
 0x193   :  { %1431 = vmatpush1.bf16.msra.mxu0 %v2281_v14  ;;  %1479 = vmatpush1.bf16.msra.mxu1 %v2284_v18 }
 0x194   :  { %1433 = vmatprep.subr.bf16.mxu0 %v2285_v6  ;;  %1481 = vmatprep.subr.bf16.mxu1 %v2288_v13 }
 0x197   :  { %1435 = vmatpush1.bf16.msra.mxu0 %v2289_v56  ;;  %1483 = vmatpush1.bf16.msra.mxu1 %v2292_v59 }
 0x198   :  { %1255 = vmatprep.subr.mxu0 %v1076_v29  ;;  %1485 = vmatprep.subr.bf16.mxu1 %v2293_v1 }
 0x19b   :  { %1256 = vmatpush1.msra.mxu0 %v1075_v41  ;;  %1487 = vmatpush1.bf16.msra.mxu1 %v2298_v31 }
 0x19c   :  { %1268 = vmatmul.mubr.f32.vlgmr.msra.gmra.mrb[0].mxu0 %v1083_v33  ;;  %1326 = vmatprep.subr.mxu1 %v1078_v10 }
 0x19f   :  { %1327 = vmatpush1.msra.mxu1 %v1077_v47 }
 0x1a0   :  { %1339 = vmatmul.mubr.f32.vlgmr.msra.gmra.mrb[0].mxu1 %v1083_v33 }
 0x26f   :  { %v1269_v43 = vpop.f32.mrb[0].mxu0 }
 0x270   :  { %v1270_v30 = vadd.f32 %v1269_v43, %v1197_v11  ;;  %v1271_v40 = vpop.f32.mrb[1].mxu0 }
 0x271   :  { %v1272_v26 = vadd.f32 %v1271_v40, %v1197_v11 }
 0x272   :  { %v1345_v53 = vadd.f32 %v1507_v32, %v1270_v30 }
 0x273   :  { %v1346_v24 = vadd.f32 %v1508_v38, %v1272_v26  ;;  %v1340_v54 = vpop.f32.mrb[0].mxu1 }
 0x274   :  { %1349 = vst [vmem:[%s2250_s6] sm:$0xff] %v1345_v53  ;;  %v1341_v44 = vadd.f32 %v1340_v54, %v1197_v11  ;;  %v1342_v52 = vpop.f32.mrb[1].mxu1 }
 0x275   :  { %1350 = vst [vmem:[%s2250_s6 + $0x8] sm:$0xff] %v1346_v24  ;;  %v1343_v9 = vadd.f32 %v1342_v52, %v1197_v11 }
 0x276   :  { %v1347_v5 = vadd.f32 %v1509_v61, %v1341_v44 }
 0x277   :  { %v1348_v45 = vadd.f32 %v1510_v39, %v1343_v9 }
 0x278   :  { %1351 = vst [vmem:[%s2250_s6 + $0x10] sm:$0xff] %v1347_v5 }
 0x279   :  { %1352 = vst [vmem:[%s2250_s6 + $0x18] sm:$0xff] %v1348_v45 }

</bundles_post_ra>
